<compile_context>
chip_gen: v7x
topology: tpu7x:2x2x1
jax: 0.10.0
libtpu: 0.0.40
codegen_flags: <defaults>
</compile_context>

<pallas_src>
import jax
import jax.numpy as jnp
from jax.experimental import pallas as pl
from jax.experimental.pallas import tpu as pltpu


OUTPUT_DIM = 10
_VMEM_LIMIT = 32 * 1024 * 1024  # safe on v5e/v6e/v7x; usage stays << this


def _round_up(x, m):
    return (x + m - 1) // m * m


def _pick_tile(m, tile):
    """M-tile (multiple of 8). Balances tiles and prefers >=2 grid steps."""
    full = _round_up(m, 8)
    if full <= tile:
        if m >= 16:
            return _round_up(-(-m // 2), 8)   # split so both v7x TCs get work
        return full
    n_steps = -(-m // tile)                   # >= 2
    return _round_up(-(-m // n_steps), 8)


# ---------------------------------------------------------------------------
# Pallas kernels
# ---------------------------------------------------------------------------
def _conv_relu_pool_kernel(a_ref, w_ref, b_ref, o_ref):
    """Fused conv(im2col matmul) + 2x2 max-pool + bias + ReLU.

    a_ref: (4, TM, K) bf16 -- 2x2 pool-window position on the leading dim
    w_ref: (K, Cout)  bf16 -- resident
    b_ref: (1, Cout)  f32  -- resident
    o_ref: (TM, Cout) bf16
    """
    _, tm, k = a_ref.shape
    cout = w_ref.shape[1]
    a = a_ref[...].reshape(4 * tm, k)                     # free merge (tm % 8 == 0)
    r = jnp.dot(a, w_ref[...], preferred_element_type=jnp.float32)
    pooled = jnp.max(r.reshape(4, tm, cout), axis=0)      # pool before bias/ReLU
    o_ref[...] = jnp.maximum(pooled + b_ref[...], 0.0).astype(o_ref.dtype)


def _conv3_mlp_kernel(a_ref, wc_ref, bc_ref, w1_ref, b1_ref, w3_ref, b3_ref,
                      o_ref):
    """Fused conv3 (+pool+bias+ReLU) -> d1 -> Dropout(eval) -> d3.

    a_ref:  (4, TB, 1152) bf16      wc_ref: (1152, 256) bf16  bc_ref: (1, 256) f32
    w1_ref: (256, 256) bf16         b1_ref: (1, 256) f32
    w3_ref: (256, 128) bf16 (10 -> 128 padded)  b3_ref: (1, 128) f32
    o_ref:  (TB, 128) f32
    """
    _, tb, k = a_ref.shape
    cc = wc_ref.shape[1]
    a = a_ref[...].reshape(4 * tb, k)
    r = jnp.dot(a, wc_ref[...], preferred_element_type=jnp.float32)
    x = jnp.maximum(jnp.max(r.reshape(4, tb, cc), axis=0) + bc_ref[...], 0.0)
    h = jnp.dot(x.astype(jnp.bfloat16), w1_ref[...],
                preferred_element_type=jnp.float32) + b1_ref[...]
    # d2 = Dropout(0.2): identity in eval mode.
    out = jnp.dot(h.astype(jnp.bfloat16), w3_ref[...],
                  preferred_element_type=jnp.float32) + b3_ref[...]
    o_ref[...] = out.astype(o_ref.dtype)


# ---------------------------------------------------------------------------
# Plain-JAX glue: transpose-free im2col with pool windows on the leading dim
# ---------------------------------------------------------------------------
def _im2col_pool_windows(x_nhwc):
    """(B, H, W, C) -> (4, B*Hp*Wp, 9*C) bf16.

    Leading dim = 2x2 pool-window offset; K ordered (kh, kw, cin) to match
    w.reshape(9*Cin, Cout).  Built from stride-2 slices (no transpose).
    """
    B, H, W, C = x_nhwc.shape
    Hp, Wp = (H - 2) // 2, (W - 2) // 2
    Mp, K = B * Hp * Wp, 9 * C

    def window(di, dj):
        slabs = [
            x_nhwc[:, di + kh: di + kh + 2 * Hp: 2,
                      dj + kw: dj + kw + 2 * Wp: 2, :]
            for kh in range(3) for kw in range(3)
        ]
        return jnp.stack(slabs, axis=3).reshape(Mp, K)    # (B,Hp,Wp,9,C)->(Mp,K)

    a = jnp.stack([window(0, 0), window(0, 1), window(1, 0), window(1, 1)],
                  axis=0)
    return a.astype(jnp.bfloat16), (B, Hp, Wp, K, Mp)


# ---------------------------------------------------------------------------
# Layer wrappers
# ---------------------------------------------------------------------------
def conv3x3_relu_pool(x_nhwc, w_kco, bias_1c, *, tile_m=512):
    """3x3 valid conv + bias + ReLU + 2x2 floor-mode max-pool (fused kernel)."""
    a, (B, Hp, Wp, K, Mp) = _im2col_pool_windows(x_nhwc)
    Cout = w_kco.shape[1]

    tm = _pick_tile(Mp, tile_m)
    Mp_pad = _round_up(Mp, tm)
    if Mp_pad > Mp:
        a = jnp.pad(a, ((0, 0), (0, Mp_pad - Mp), (0, 0)))

    out = pl.pallas_call(
        _conv_relu_pool_kernel,
        out_shape=jax.ShapeDtypeStruct((Mp_pad, Cout), jnp.bfloat16),
        grid=(Mp_pad // tm,),
        in_specs=[
            pl.BlockSpec((4, tm, K), lambda i: (0, i, 0)),   # streamed A
            pl.BlockSpec((K, Cout), lambda i: (0, 0)),       # resident W
            pl.BlockSpec((1, Cout), lambda i: (0, 0)),       # resident bias
        ],
        out_specs=pl.BlockSpec((tm, Cout), lambda i: (i, 0)),
        compiler_params=pltpu.CompilerParams(
            dimension_semantics=("parallel",),
            vmem_limit_bytes=_VMEM_LIMIT),
    )(a, w_kco, bias_1c)

    return out[:Mp].reshape(B, Hp, Wp, Cout)


def conv3_mlp_head(x_nhwc, p, *, tile_b=256):
    """Fused conv3(+pool+ReLU) -> flatten -> d1 -> Dropout(eval) -> d3."""
    a, (B, Hp, Wp, K, Mp) = _im2col_pool_windows(x_nhwc)    # Hp=Wp=1, Mp=B
    Cc = p["conv3_w"].shape[1]
    Hd = p["d1_w"].shape[1]
    N_pad = p["d3_w"].shape[1]

    tb = _pick_tile(Mp, tile_b)
    B_pad = _round_up(Mp, tb)
    if B_pad > Mp:
        a = jnp.pad(a, ((0, 0), (0, B_pad - Mp), (0, 0)))

    out = pl.pallas_call(
        _conv3_mlp_kernel,
        out_shape=jax.ShapeDtypeStruct((B_pad, N_pad), jnp.float32),
        grid=(B_pad // tb,),
        in_specs=[
            pl.BlockSpec((4, tb, K), lambda i: (0, i, 0)),   # streamed A
            pl.BlockSpec((K, Cc), lambda i: (0, 0)),         # resident conv3 W
            pl.BlockSpec((1, Cc), lambda i: (0, 0)),
            pl.BlockSpec((Cc, Hd), lambda i: (0, 0)),        # resident d1 W
            pl.BlockSpec((1, Hd), lambda i: (0, 0)),
            pl.BlockSpec((Hd, N_pad), lambda i: (0, 0)),     # resident d3 W (padded)
            pl.BlockSpec((1, N_pad), lambda i: (0, 0)),
        ],
        out_specs=pl.BlockSpec((tb, N_pad), lambda i: (i, 0)),
        compiler_params=pltpu.CompilerParams(
            dimension_semantics=("parallel",),
            vmem_limit_bytes=_VMEM_LIMIT),
    )(a, p["conv3_w"], p["conv3_b"], p["d1_w"], p["d1_b"],
      p["d3_w"], p["d3_b"])

    return out[:B, :OUTPUT_DIM]


# ---------------------------------------------------------------------------
# Parameters
# ---------------------------------------------------------------------------
def init_params(key):
    """Deterministic synthetic parameters with the module's shapes."""
    ks = jax.random.split(key, 10)
    s = 0.05
    return {
        # conv weights stored as (KH, KW, Cin, Cout)
        "conv1_w": s * jax.random.normal(ks[0], (3, 3, 1, 64), jnp.float32),
        "conv1_b": s * jax.random.normal(ks[1], (64,), jnp.float32),
        "conv2_w": s * jax.random.normal(ks[2], (3, 3, 64, 128), jnp.float32),
        "conv2_b": s * jax.random.normal(ks[3], (128,), jnp.float32),
        "conv3_w": s * jax.random.normal(ks[4], (3, 3, 128, 256), jnp.float32),
        "conv3_b": s * jax.random.normal(ks[5], (256,), jnp.float32),
        # linear weights stored as (in, out)
        "d1_w": s * jax.random.normal(ks[6], (256, 256), jnp.float32),
        "d1_b": s * jax.random.normal(ks[7], (256,), jnp.float32),
        "d3_w": s * jax.random.normal(ks[8], (256, OUTPUT_DIM), jnp.float32),
        "d3_b": s * jax.random.normal(ks[9], (OUTPUT_DIM,), jnp.float32),
    }


def prepare_params(params):
    """One-time weight layout/cast prep (bf16, (K,Cout), padded d3)."""
    def conv_w(name):
        w = params[name]                                  # (3, 3, Cin, Cout)
        return w.reshape(-1, w.shape[-1]).astype(jnp.bfloat16)

    def bias(name):
        return params[name].reshape(1, -1).astype(jnp.float32)

    n_pad = _round_up(OUTPUT_DIM, 128)
    return {
        "conv1_w": conv_w("conv1_w"), "conv1_b": bias("conv1_b"),
        "conv2_w": conv_w("conv2_w"), "conv2_b": bias("conv2_b"),
        "conv3_w": conv_w("conv3_w"), "conv3_b": bias("conv3_b"),
        "d1_w": params["d1_w"].astype(jnp.bfloat16), "d1_b": bias("d1_b"),
        "d3_w": jnp.pad(params["d3_w"],
                        ((0, 0), (0, n_pad - OUTPUT_DIM))).astype(jnp.bfloat16),
        "d3_b": jnp.pad(params["d3_b"],
                        (0, n_pad - OUTPUT_DIM)).reshape(1, -1).astype(jnp.float32),
    }


# ---------------------------------------------------------------------------
# Model forward
# ---------------------------------------------------------------------------
def cnn_forward(prepped, x_nchw):
    """x_nchw: (B, 1, 28, 28) float32  ->  (B, 10) float32."""
    x = jnp.transpose(x_nchw, (0, 2, 3, 1)).astype(jnp.bfloat16)      # NCHW->NHWC
    x = conv3x3_relu_pool(x, prepped["conv1_w"], prepped["conv1_b"])  # (B,13,13,64)
    x = conv3x3_relu_pool(x, prepped["conv2_w"], prepped["conv2_b"])  # (B,5,5,128)
    return conv3_mlp_head(x, prepped)                                  # (B,10)


def reference_forward(params, x_nchw):
    """Pure-JAX f32 reference (for tolerance check)."""
    x = jnp.transpose(x_nchw, (0, 2, 3, 1)).astype(jnp.float32)

    def block(x, w, b):
        y = jax.lax.conv_general_dilated(
            x, w, window_strides=(1, 1), padding="VALID",
            dimension_numbers=("NHWC", "HWIO", "NHWC"))
        y = jnp.maximum(y + b, 0.0)
        return jax.lax.reduce_window(y, -jnp.inf, jax.lax.max,
                                     (1, 2, 2, 1), (1, 2, 2, 1), "VALID")

    x = block(x, params["conv1_w"], params["conv1_b"])
    x = block(x, params["conv2_w"], params["conv2_b"])
    x = block(x, params["conv3_w"], params["conv3_b"])
    x = x.reshape(x.shape[0], -1)
    h = x @ params["d1_w"] + params["d1_b"]
    return h @ params["d3_w"] + params["d3_b"]


if __name__ == "__main__":
    key = jax.random.PRNGKey(0)
    k_param, k_x = jax.random.split(key)
    params = init_params(k_param)
    prepped = prepare_params(params)          # weight prep done once, not per call

    # MNIST-shaped input (the architecture requires 28x28 to reach 256*1*1).
    batch = 2
    x = jax.random.normal(k_x, (batch, 1, 28, 28), jnp.float32)

    out = jax.block_until_ready(jax.jit(cnn_forward)(prepped, x))
    assert out.shape == (batch, OUTPUT_DIM), out.shape
    assert bool(jnp.all(jnp.isfinite(out))), "non-finite output"

    ref = reference_forward(params, x)
    max_err = float(jnp.max(jnp.abs(out - ref)))
    assert max_err < 5e-2, f"mismatch vs f32 reference: max_err={max_err}"
    print("KERNEL_OK")
</pallas_src>

<mosaic_0001>
module attributes {stable_mosaic.version = 11 : i64} {
  func.func @_conv_relu_pool_kernel(%arg0: i32, %arg1: memref<4x176x9xbf16, #tpu.memory_space<vmem>>, %arg2: memref<9x64xbf16, #tpu.memory_space<vmem>>, %arg3: memref<1x64xf32, #tpu.memory_space<vmem>>, %arg4: memref<176x64xbf16, #tpu.memory_space<vmem>>) attributes {dimension_semantics = [#tpu.dimension_semantics<parallel>], iteration_bounds = array<i64: 2>, scalar_prefetch = 0 : i64, scratch_operands = 0 : i64, tpu.core_type = #tpu.core_type<tc>, window_params = [{transform_indices = @transform_0, window_bounds = array<i64: 4, 176, 9>}, {pipeline_mode = #tpu.pipeline_mode<synchronous>, transform_indices = @transform_1, window_bounds = array<i64: 9, 64>}, {pipeline_mode = #tpu.pipeline_mode<synchronous>, transform_indices = @transform_2, window_bounds = array<i64: 1, 64>}, {transform_indices = @transform_3, window_bounds = array<i64: 176, 64>}]} {
    %c0 = arith.constant 0 : index
    %c0_0 = arith.constant 0 : index
    %c0_1 = arith.constant 0 : index
    %0 = vector.load %arg1[%c0, %c0_0, %c0_1] : memref<4x176x9xbf16, #tpu.memory_space<vmem>>, vector<4x176x9xbf16>
    %1 = vector.shape_cast %0 : vector<4x176x9xbf16> to vector<704x9xbf16>
    %c0_2 = arith.constant 0 : index
    %c0_3 = arith.constant 0 : index
    %2 = vector.load %arg2[%c0_2, %c0_3] : memref<9x64xbf16, #tpu.memory_space<vmem>>, vector<9x64xbf16>
    %cst = arith.constant dense<0.000000e+00> : vector<704x64xf32>
    %3 = tpu.matmul %1, %2, %cst {dimension_numbers = #tpu.dot_dimension_numbers<[1], [0], [0], [1], [0, 0, 1, 1], [], []>} : vector<704x9xbf16>, vector<9x64xbf16>, vector<704x64xf32> -> vector<704x64xf32>
    %4 = vector.shape_cast %3 : vector<704x64xf32> to vector<4x176x64xf32>
    %cst_4 = arith.constant dense<0xFF800000> : vector<176x64xf32>
    %5 = vector.multi_reduction <maximumf>, %4, %cst_4 [0] : vector<4x176x64xf32> to vector<176x64xf32>
    %c0_5 = arith.constant 0 : index
    %c0_6 = arith.constant 0 : index
    %6 = vector.load %arg3[%c0_5, %c0_6] : memref<1x64xf32, #tpu.memory_space<vmem>>, vector<1x64xf32>
    %7 = vector.broadcast %6 : vector<1x64xf32> to vector<176x64xf32>
    %8 = arith.addf %5, %7 : vector<176x64xf32>
    %cst_7 = arith.constant 0.000000e+00 : f32
    %9 = vector.broadcast %cst_7 : f32 to vector<176x64xf32>
    %10 = arith.maximumf %8, %9 : vector<176x64xf32>
    %11 = arith.truncf %10 : vector<176x64xf32> to vector<176x64xbf16>
    %c0_8 = arith.constant 0 : index
    %c0_9 = arith.constant 0 : index
    %12 = vector.load %arg4[%c0_8, %c0_9] : memref<176x64xbf16, #tpu.memory_space<vmem>>, vector<176x64xbf16>
    tpu.vector_store %arg4[%c0_8, %c0_9], %11 {strides = array<i32>} : memref<176x64xbf16, #tpu.memory_space<vmem>>, vector<176x64xbf16>,
    return
  }
  func.func @transform_0(%arg0: i32) -> (i32, i32, i32) {
    %c0_i32 = arith.constant 0 : i32
    %c0_i32_0 = arith.constant 0 : i32
    %c0_i32_1 = arith.constant 0 : i32
    return %c0_i32, %arg0, %c0_i32_0 : i32, i32, i32
  }
  func.func @transform_1(%arg0: i32) -> (i32, i32) {
    %c0_i32 = arith.constant 0 : i32
    %c0_i32_0 = arith.constant 0 : i32
    %c0_i32_1 = arith.constant 0 : i32
    return %c0_i32, %c0_i32_0 : i32, i32
  }
  func.func @transform_2(%arg0: i32) -> (i32, i32) {
    %c0_i32 = arith.constant 0 : i32
    %c0_i32_0 = arith.constant 0 : i32
    %c0_i32_1 = arith.constant 0 : i32
    return %c0_i32, %c0_i32_0 : i32, i32
  }
  func.func @transform_3(%arg0: i32) -> (i32, i32) {
    %c0_i32 = arith.constant 0 : i32
    %c0_i32_0 = arith.constant 0 : i32
    return %arg0, %c0_i32 : i32, i32
  }
}

module attributes {stable_mosaic.version = 11 : i64} {
  func.func @_conv_relu_pool_kernel(%arg0: i32, %arg1: memref<4x32x576xbf16, #tpu.memory_space<vmem>>, %arg2: memref<576x128xbf16, #tpu.memory_space<vmem>>, %arg3: memref<1x128xf32, #tpu.memory_space<vmem>>, %arg4: memref<32x128xbf16, #tpu.memory_space<vmem>>) attributes {dimension_semantics = [#tpu.dimension_semantics<parallel>], iteration_bounds = array<i64: 2>, scalar_prefetch = 0 : i64, scratch_operands = 0 : i64, tpu.core_type = #tpu.core_type<tc>, window_params = [{transform_indices = @transform_0, window_bounds = array<i64: 4, 32, 576>}, {pipeline_mode = #tpu.pipeline_mode<synchronous>, transform_indices = @transform_1, window_bounds = array<i64: 576, 128>}, {pipeline_mode = #tpu.pipeline_mode<synchronous>, transform_indices = @transform_2, window_bounds = array<i64: 1, 128>}, {transform_indices = @transform_3, window_bounds = array<i64: 32, 128>}]} {
    %c0 = arith.constant 0 : index
    %c0_0 = arith.constant 0 : index
    %c0_1 = arith.constant 0 : index
    %0 = vector.load %arg1[%c0, %c0_0, %c0_1] : memref<4x32x576xbf16, #tpu.memory_space<vmem>>, vector<4x32x576xbf16>
    %1 = vector.shape_cast %0 : vector<4x32x576xbf16> to vector<128x576xbf16>
    %c0_2 = arith.constant 0 : index
    %c0_3 = arith.constant 0 : index
    %2 = vector.load %arg2[%c0_2, %c0_3] : memref<576x128xbf16, #tpu.memory_space<vmem>>, vector<576x128xbf16>
    %cst = arith.constant dense<0.000000e+00> : vector<128x128xf32>
    %3 = tpu.matmul %1, %2, %cst {dimension_numbers = #tpu.dot_dimension_numbers<[1], [0], [0], [1], [0, 0, 1, 1], [], []>} : vector<128x576xbf16>, vector<576x128xbf16>, vector<128x128xf32> -> vector<128x128xf32>
    %4 = vector.shape_cast %3 : vector<128x128xf32> to vector<4x32x128xf32>
    %cst_4 = arith.constant dense<0xFF800000> : vector<32x128xf32>
    %5 = vector.multi_reduction <maximumf>, %4, %cst_4 [0] : vector<4x32x128xf32> to vector<32x128xf32>
    %c0_5 = arith.constant 0 : index
    %c0_6 = arith.constant 0 : index
    %6 = vector.load %arg3[%c0_5, %c0_6] : memref<1x128xf32, #tpu.memory_space<vmem>>, vector<1x128xf32>
    %7 = vector.broadcast %6 : vector<1x128xf32> to vector<32x128xf32>
    %8 = arith.addf %5, %7 : vector<32x128xf32>
    %cst_7 = arith.constant 0.000000e+00 : f32
    %9 = vector.broadcast %cst_7 : f32 to vector<32x128xf32>
    %10 = arith.maximumf %8, %9 : vector<32x128xf32>
    %11 = arith.truncf %10 : vector<32x128xf32> to vector<32x128xbf16>
    %c0_8 = arith.constant 0 : index
    %c0_9 = arith.constant 0 : index
    %12 = vector.load %arg4[%c0_8, %c0_9] : memref<32x128xbf16, #tpu.memory_space<vmem>>, vector<32x128xbf16>
    tpu.vector_store %arg4[%c0_8, %c0_9], %11 {strides = array<i32>} : memref<32x128xbf16, #tpu.memory_space<vmem>>, vector<32x128xbf16>,
    return
  }
  func.func @transform_0(%arg0: i32) -> (i32, i32, i32) {
    %c0_i32 = arith.constant 0 : i32
    %c0_i32_0 = arith.constant 0 : i32
    %c0_i32_1 = arith.constant 0 : i32
    return %c0_i32, %arg0, %c0_i32_0 : i32, i32, i32
  }
  func.func @transform_1(%arg0: i32) -> (i32, i32) {
    %c0_i32 = arith.constant 0 : i32
    %c0_i32_0 = arith.constant 0 : i32
    %c0_i32_1 = arith.constant 0 : i32
    return %c0_i32, %c0_i32_0 : i32, i32
  }
  func.func @transform_2(%arg0: i32) -> (i32, i32) {
    %c0_i32 = arith.constant 0 : i32
    %c0_i32_0 = arith.constant 0 : i32
    %c0_i32_1 = arith.constant 0 : i32
    return %c0_i32, %c0_i32_0 : i32, i32
  }
  func.func @transform_3(%arg0: i32) -> (i32, i32) {
    %c0_i32 = arith.constant 0 : i32
    %c0_i32_0 = arith.constant 0 : i32
    return %arg0, %c0_i32 : i32, i32
  }
}

module attributes {stable_mosaic.version = 11 : i64} {
  func.func @_conv3_mlp_kernel(%arg0: i32, %arg1: memref<4x8x1152xbf16, #tpu.memory_space<vmem>>, %arg2: memref<1152x256xbf16, #tpu.memory_space<vmem>>, %arg3: memref<1x256xf32, #tpu.memory_space<vmem>>, %arg4: memref<256x256xbf16, #tpu.memory_space<vmem>>, %arg5: memref<1x256xf32, #tpu.memory_space<vmem>>, %arg6: memref<256x128xbf16, #tpu.memory_space<vmem>>, %arg7: memref<1x128xf32, #tpu.memory_space<vmem>>, %arg8: memref<8x128xf32, #tpu.memory_space<vmem>>) attributes {dimension_semantics = [#tpu.dimension_semantics<parallel>], iteration_bounds = array<i64: 1>, scalar_prefetch = 0 : i64, scratch_operands = 0 : i64, tpu.core_type = #tpu.core_type<tc>, window_params = [{transform_indices = @transform_0, window_bounds = array<i64: 4, 8, 1152>}, {pipeline_mode = #tpu.pipeline_mode<synchronous>, transform_indices = @transform_1, window_bounds = array<i64: 1152, 256>}, {pipeline_mode = #tpu.pipeline_mode<synchronous>, transform_indices = @transform_2, window_bounds = array<i64: 1, 256>}, {pipeline_mode = #tpu.pipeline_mode<synchronous>, transform_indices = @transform_3, window_bounds = array<i64: 256, 256>}, {pipeline_mode = #tpu.pipeline_mode<synchronous>, transform_indices = @transform_4, window_bounds = array<i64: 1, 256>}, {pipeline_mode = #tpu.pipeline_mode<synchronous>, transform_indices = @transform_5, window_bounds = array<i64: 256, 128>}, {pipeline_mode = #tpu.pipeline_mode<synchronous>, transform_indices = @transform_6, window_bounds = array<i64: 1, 128>}, {transform_indices = @transform_7, window_bounds = array<i64: 8, 128>}]} {
    %c0 = arith.constant 0 : index
    %c0_0 = arith.constant 0 : index
    %c0_1 = arith.constant 0 : index
    %0 = vector.load %arg1[%c0, %c0_0, %c0_1] : memref<4x8x1152xbf16, #tpu.memory_space<vmem>>, vector<4x8x1152xbf16>
    %1 = vector.shape_cast %0 : vector<4x8x1152xbf16> to vector<32x1152xbf16>
    %c0_2 = arith.constant 0 : index
    %c0_3 = arith.constant 0 : index
    %2 = vector.load %arg2[%c0_2, %c0_3] : memref<1152x256xbf16, #tpu.memory_space<vmem>>, vector<1152x256xbf16>
    %cst = arith.constant dense<0.000000e+00> : vector<32x256xf32>
    %3 = tpu.matmul %1, %2, %cst {dimension_numbers = #tpu.dot_dimension_numbers<[1], [0], [0], [1], [0, 0, 1, 1], [], []>} : vector<32x1152xbf16>, vector<1152x256xbf16>, vector<32x256xf32> -> vector<32x256xf32>
    %4 = vector.shape_cast %3 : vector<32x256xf32> to vector<4x8x256xf32>
    %cst_4 = arith.constant dense<0xFF800000> : vector<8x256xf32>
    %5 = vector.multi_reduction <maximumf>, %4, %cst_4 [0] : vector<4x8x256xf32> to vector<8x256xf32>
    %c0_5 = arith.constant 0 : index
    %c0_6 = arith.constant 0 : index
    %6 = vector.load %arg3[%c0_5, %c0_6] : memref<1x256xf32, #tpu.memory_space<vmem>>, vector<1x256xf32>
    %7 = vector.broadcast %6 : vector<1x256xf32> to vector<8x256xf32>
    %8 = arith.addf %5, %7 : vector<8x256xf32>
    %cst_7 = arith.constant 0.000000e+00 : f32
    %9 = vector.broadcast %cst_7 : f32 to vector<8x256xf32>
    %10 = arith.maximumf %8, %9 : vector<8x256xf32>
    %11 = arith.truncf %10 : vector<8x256xf32> to vector<8x256xbf16>
    %c0_8 = arith.constant 0 : index
    %c0_9 = arith.constant 0 : index
    %12 = vector.load %arg4[%c0_8, %c0_9] : memref<256x256xbf16, #tpu.memory_space<vmem>>, vector<256x256xbf16>
    %cst_10 = arith.constant dense<0.000000e+00> : vector<8x256xf32>
    %13 = tpu.matmul %11, %12, %cst_10 {dimension_numbers = #tpu.dot_dimension_numbers<[1], [0], [0], [1], [0, 0, 1, 1], [], []>} : vector<8x256xbf16>, vector<256x256xbf16>, vector<8x256xf32> -> vector<8x256xf32>
    %c0_11 = arith.constant 0 : index
    %c0_12 = arith.constant 0 : index
    %14 = vector.load %arg5[%c0_11, %c0_12] : memref<1x256xf32, #tpu.memory_space<vmem>>, vector<1x256xf32>
    %15 = vector.broadcast %14 : vector<1x256xf32> to vector<8x256xf32>
    %16 = arith.addf %13, %15 : vector<8x256xf32>
    %17 = arith.truncf %16 : vector<8x256xf32> to vector<8x256xbf16>
    %c0_13 = arith.constant 0 : index
    %c0_14 = arith.constant 0 : index
    %18 = vector.load %arg6[%c0_13, %c0_14] : memref<256x128xbf16, #tpu.memory_space<vmem>>, vector<256x128xbf16>
    %cst_15 = arith.constant dense<0.000000e+00> : vector<8x128xf32>
    %19 = tpu.matmul %17, %18, %cst_15 {dimension_numbers = #tpu.dot_dimension_numbers<[1], [0], [0], [1], [0, 0, 1, 1], [], []>} : vector<8x256xbf16>, vector<256x128xbf16>, vector<8x128xf32> -> vector<8x128xf32>
    %c0_16 = arith.constant 0 : index
    %c0_17 = arith.constant 0 : index
    %20 = vector.load %arg7[%c0_16, %c0_17] : memref<1x128xf32, #tpu.memory_space<vmem>>, vector<1x128xf32>
    %21 = vector.broadcast %20 : vector<1x128xf32> to vector<8x128xf32>
    %22 = arith.addf %19, %21 : vector<8x128xf32>
    %c0_18 = arith.constant 0 : index
    %c0_19 = arith.constant 0 : index
    %23 = vector.load %arg8[%c0_18, %c0_19] : memref<8x128xf32, #tpu.memory_space<vmem>>, vector<8x128xf32>
    tpu.vector_store %arg8[%c0_18, %c0_19], %22 {strides = array<i32>} : memref<8x128xf32, #tpu.memory_space<vmem>>, vector<8x128xf32>,
    return
  }
  func.func @transform_0(%arg0: i32) -> (i32, i32, i32) {
    %c0_i32 = arith.constant 0 : i32
    %c0_i32_0 = arith.constant 0 : i32
    %c0_i32_1 = arith.constant 0 : i32
    return %c0_i32, %arg0, %c0_i32_0 : i32, i32, i32
  }
  func.func @transform_1(%arg0: i32) -> (i32, i32) {
    %c0_i32 = arith.constant 0 : i32
    %c0_i32_0 = arith.constant 0 : i32
    %c0_i32_1 = arith.constant 0 : i32
    return %c0_i32, %c0_i32_0 : i32, i32
  }
  func.func @transform_2(%arg0: i32) -> (i32, i32) {
    %c0_i32 = arith.constant 0 : i32
    %c0_i32_0 = arith.constant 0 : i32
    %c0_i32_1 = arith.constant 0 : i32
    return %c0_i32, %c0_i32_0 : i32, i32
  }
  func.func @transform_3(%arg0: i32) -> (i32, i32) {
    %c0_i32 = arith.constant 0 : i32
    %c0_i32_0 = arith.constant 0 : i32
    %c0_i32_1 = arith.constant 0 : i32
    return %c0_i32, %c0_i32_0 : i32, i32
  }
  func.func @transform_4(%arg0: i32) -> (i32, i32) {
    %c0_i32 = arith.constant 0 : i32
    %c0_i32_0 = arith.constant 0 : i32
    %c0_i32_1 = arith.constant 0 : i32
    return %c0_i32, %c0_i32_0 : i32, i32
  }
  func.func @transform_5(%arg0: i32) -> (i32, i32) {
    %c0_i32 = arith.constant 0 : i32
    %c0_i32_0 = arith.constant 0 : i32
    %c0_i32_1 = arith.constant 0 : i32
    return %c0_i32, %c0_i32_0 : i32, i32
  }
  func.func @transform_6(%arg0: i32) -> (i32, i32) {
    %c0_i32 = arith.constant 0 : i32
    %c0_i32_0 = arith.constant 0 : i32
    %c0_i32_1 = arith.constant 0 : i32
    return %c0_i32, %c0_i32_0 : i32, i32
  }
  func.func @transform_7(%arg0: i32) -> (i32, i32) {
    %c0_i32 = arith.constant 0 : i32
    %c0_i32_0 = arith.constant 0 : i32
    return %arg0, %c0_i32 : i32, i32
  }
}

</mosaic_0001>

<bundles_post_ra>
// kernel: cnn_forward.3
= control target key start
LH: loop header
LB: loop body
LE: loop exit
PB: predicated region body
PF: predicated region fallthrough
CT: control target
= control target key end

     0   :  { %s2181_s12 = smov 0   ;;  %s2183_s13 = smov 0   ;;  %s2744_s0 = inlined_call_operand.vmem [shape: bf16[4,352,9], index: 0, kind: input, shape index: {}]   ;;  %s2745_s1 = inlined_call_operand.vmem [shape: bf16[9,64], index: 1, kind: input, shape index: {}]   ;;  %s2746_s2 = inlined_call_operand.vmem [shape: f32[1,64], index: 2, kind: input, shape index: {}]   ;;  %s2747_s3 = inlined_call_operand.vmem [shape: bf16[352,64], index: 3, kind: output, shape index: {}]  }
   0x1   :  { %s2185_s14 = smov 0  }
   0x2 LB: > { %s1783_s15 = sadd.s32 4294967295, %s2158_s14   ;;  %s2198_s16 = sadd.s32 1, %s2158_s14   ;;  %s2158_s14 = sphi %s2185_s14, %s2750_s14   ;;  %s2154_s13 = sphi %s2183_s13, %s2749_s13   ;;  %s2150_s12 = sphi %s2181_s12, %s2748_s12  }
   0x3   : > { %s17_s17 = ssub.s32 %s2158_s14, %s2198_s16  ;;  %s20_s18 = sadd.s32 1, %s2154_s13 }
   0x4   : > { %p18_p0 = scmp.eq.s32.totalorder %s17_s17, 0  ;;  %p27_p1 = scmp.ne.s32.totalorder %s2154_s13, %s2150_s12 }
   0x5   : > { %p28_p2 = scmp.eq.s32.totalorder %s2158_s14, 0  ;;  %p1786_p4 = scmp.ge.s32.totalorder %s2158_s14, 2 }
   0x6   : > { %s2207_s19 = scalar_select %p18_p0, %s2154_s13, %s20_s18  }
   0x7   : > { %p29_p3 = por %p28_p2, %p27_p1  ;;  %127 = sbr.rel (%p1786_p4) target bundleno = 41 (0x29), region = 24 }
   0xe   : > { %130 = sbr.rel (!%p29_p3) target bundleno = 41 (0x29), region = 28  ;;  %s132_s20 = sand.u32 (%p29_p3), 1, %s2154_s13  }
   0xf   : > { %s1904_s21 = smul.u32 (%p29_p3), 88, %s2158_s14 }
  0x10   : > { %s2064_s22 = smul.u32 (%p29_p3), 352, %s132_s20 }
  0x11   : > { %s2215_s25 = scalar_lea.vmem (%p29_p3), %s2744_s0, %s1904_s21 }
  0x12   : > { %v153_v0 = vld [vmem:[%s2215_s25] sm:$0xff] (%p29_p3)   ;;  %v157_v1 = vld [vmem:[%s2215_s25 + $0x8] sm:$0xff] (%p29_p3)   ;;  %v161_v2 = vld [vmem:[%s2215_s25 + $0x10] sm:$0xff] (%p29_p3)   ;;  %s2220_s26 = scalar_lea.vmem (%p29_p3), [#allocation2], %s2064_s22 }
  0x13   : > { %154 = vst [vmem:[%s2220_s26] sm:$0xff] (%p29_p3), %v153_v0   ;;  %158 = vst [vmem:[%s2220_s26 + $0x8] sm:$0xff] (%p29_p3), %v157_v1   ;;  %v165_v3 = vld [vmem:[%s2215_s25 + $0x18] sm:$0xff] (%p29_p3)   ;;  %v169_v4 = vld [vmem:[%s2215_s25 + $0x20] sm:$0xff] (%p29_p3)  }
  0x14   : > { %162 = vst [vmem:[%s2220_s26 + $0x10] sm:$0xff] (%p29_p3), %v161_v2   ;;  %v173_v5 = vld [vmem:[%s2215_s25 + $0x28] sm:$0xff] (%p29_p3)   ;;  %166 = vst [vmem:[%s2220_s26 + $0x18] sm:$0xff] (%p29_p3), %v165_v3   ;;  %v177_v6 = vld [vmem:[%s2215_s25 + $0x30] sm:$0xff] (%p29_p3)  }
  0x15   : > { %170 = vst [vmem:[%s2220_s26 + $0x20] sm:$0xff] %v169_v4   ;;  %174 = vst [vmem:[%s2220_s26 + $0x28] sm:$0xff] %v173_v5   ;;  %v181_v7 = vld [vmem:[%s2215_s25 + $0x38] sm:$0xff]   ;;  %v185_v8 = vld [vmem:[%s2215_s25 + $0x40] sm:$0xff]  }
  0x16   : > { %178 = vst [vmem:[%s2220_s26 + $0x30] sm:$0xff] %v177_v6   ;;  %182 = vst [vmem:[%s2220_s26 + $0x38] sm:$0xff] %v181_v7   ;;  %v189_v9 = vld [vmem:[%s2215_s25 + $0x48] sm:$0xff]   ;;  %v193_v10 = vld [vmem:[%s2215_s25 + $0x50] sm:$0xff]  }
  0x17   : > { %186 = vst [vmem:[%s2220_s26 + $0x40] sm:$0xff] %v185_v8   ;;  %v197_v11 = vld [vmem:[%s2215_s25 + $0xb0] sm:$0xff]   ;;  %190 = vst [vmem:[%s2220_s26 + $0x48] sm:$0xff] %v189_v9   ;;  %v201_v12 = vld [vmem:[%s2215_s25 + $0xb8] sm:$0xff]  }
  0x18   : > { %194 = vst [vmem:[%s2220_s26 + $0x50] sm:$0xff] %v193_v10   ;;  %198 = vst [vmem:[%s2220_s26 + $0x58] sm:$0xff] %v197_v11   ;;  %v205_v13 = vld [vmem:[%s2215_s25 + $0xc0] sm:$0xff]   ;;  %v209_v14 = vld [vmem:[%s2215_s25 + $0xc8] sm:$0xff]  }
  0x19   : > { %202 = vst [vmem:[%s2220_s26 + $0x60] sm:$0xff] %v201_v12   ;;  %206 = vst [vmem:[%s2220_s26 + $0x68] sm:$0xff] %v205_v13   ;;  %v213_v15 = vld [vmem:[%s2215_s25 + $0xd0] sm:$0xff]   ;;  %v217_v16 = vld [vmem:[%s2215_s25 + $0xd8] sm:$0xff]  }
  0x1a   : > { %210 = vst [vmem:[%s2220_s26 + $0x70] sm:$0xff] %v209_v14   ;;  %v221_v17 = vld [vmem:[%s2215_s25 + $0xe0] sm:$0xff]   ;;  %214 = vst [vmem:[%s2220_s26 + $0x78] sm:$0xff] %v213_v15   ;;  %v225_v18 = vld [vmem:[%s2215_s25 + $0xe8] sm:$0xff]  }
  0x1b   : > { %218 = vst [vmem:[%s2220_s26 + $0x80] sm:$0xff] %v217_v16   ;;  %222 = vst [vmem:[%s2220_s26 + $0x88] sm:$0xff] %v221_v17   ;;  %v229_v19 = vld [vmem:[%s2215_s25 + $0xf0] sm:$0xff]   ;;  %v233_v20 = vld [vmem:[%s2215_s25 + $0xf8] sm:$0xff]  }
  0x1c   : > { %226 = vst [vmem:[%s2220_s26 + $0x90] sm:$0xff] %v225_v18   ;;  %230 = vst [vmem:[%s2220_s26 + $0x98] sm:$0xff] %v229_v19   ;;  %v237_v21 = vld [vmem:[%s2215_s25 + $0x100] sm:$0xff]   ;;  %v245_v23 = vld [vmem:[%s2215_s25 + $0x168] sm:$0xff]  }
  0x1d   : > { %234 = vst [vmem:[%s2220_s26 + $0xa0] sm:$0xff] %v233_v20   ;;  %v241_v22 = vld [vmem:[%s2215_s25 + $0x160] sm:$0xff]   ;;  %238 = vst [vmem:[%s2220_s26 + $0xa8] sm:$0xff] %v237_v21   ;;  %v249_v24 = vld [vmem:[%s2215_s25 + $0x170] sm:$0xff]  }
  0x1e   : > { %242 = vst [vmem:[%s2220_s26 + $0xb0] sm:$0xff] %v241_v22   ;;  %246 = vst [vmem:[%s2220_s26 + $0xb8] sm:$0xff] %v245_v23   ;;  %v253_v25 = vld [vmem:[%s2215_s25 + $0x178] sm:$0xff]   ;;  %v257_v26 = vld [vmem:[%s2215_s25 + $0x180] sm:$0xff]  }
  0x1f   : > { %250 = vst [vmem:[%s2220_s26 + $0xc0] sm:$0xff] %v249_v24   ;;  %254 = vst [vmem:[%s2220_s26 + $0xc8] sm:$0xff] %v253_v25   ;;  %v261_v27 = vld [vmem:[%s2215_s25 + $0x188] sm:$0xff]   ;;  %v265_v28 = vld [vmem:[%s2215_s25 + $0x190] sm:$0xff]  }
  0x20   : > { %258 = vst [vmem:[%s2220_s26 + $0xd0] sm:$0xff] %v257_v26   ;;  %v269_v29 = vld [vmem:[%s2215_s25 + $0x198] sm:$0xff]   ;;  %262 = vst [vmem:[%s2220_s26 + $0xd8] sm:$0xff] %v261_v27   ;;  %v273_v30 = vld [vmem:[%s2215_s25 + $0x1a0] sm:$0xff]  }
  0x21   : > { %266 = vst [vmem:[%s2220_s26 + $0xe0] sm:$0xff] %v265_v28   ;;  %270 = vst [vmem:[%s2220_s26 + $0xe8] sm:$0xff] %v269_v29   ;;  %v277_v31 = vld [vmem:[%s2215_s25 + $0x1a8] sm:$0xff]   ;;  %v281_v32 = vld [vmem:[%s2215_s25 + $0x1b0] sm:$0xff]  }
  0x22   : > { %274 = vst [vmem:[%s2220_s26 + $0xf0] sm:$0xff] %v273_v30   ;;  %278 = vst [vmem:[%s2220_s26 + $0xf8] sm:$0xff] %v277_v31   ;;  %v285_v33 = vld [vmem:[%s2215_s25 + $0x210] sm:$0xff]   ;;  %v289_v34 = vld [vmem:[%s2215_s25 + $0x218] sm:$0xff]  }
  0x23   : > { %282 = vst [vmem:[%s2220_s26 + $0x100] sm:$0xff] %v281_v32   ;;  %v293_v35 = vld [vmem:[%s2215_s25 + $0x220] sm:$0xff]   ;;  %286 = vst [vmem:[%s2220_s26 + $0x108] sm:$0xff] %v285_v33   ;;  %v297_v36 = vld [vmem:[%s2215_s25 + $0x228] sm:$0xff]  }
  0x24   : > { %290 = vst [vmem:[%s2220_s26 + $0x110] sm:$0xff] %v289_v34   ;;  %294 = vst [vmem:[%s2220_s26 + $0x118] sm:$0xff] %v293_v35   ;;  %v301_v37 = vld [vmem:[%s2215_s25 + $0x230] sm:$0xff]   ;;  %v305_v38 = vld [vmem:[%s2215_s25 + $0x238] sm:$0xff]  }
  0x25   : > { %298 = vst [vmem:[%s2220_s26 + $0x120] sm:$0xff] %v297_v36   ;;  %302 = vst [vmem:[%s2220_s26 + $0x128] sm:$0xff] %v301_v37   ;;  %v309_v39 = vld [vmem:[%s2215_s25 + $0x240] sm:$0xff]   ;;  %v313_v40 = vld [vmem:[%s2215_s25 + $0x248] sm:$0xff]  }
  0x26   : > { %306 = vst [vmem:[%s2220_s26 + $0x130] sm:$0xff] %v305_v38   ;;  %v317_v41 = vld [vmem:[%s2215_s25 + $0x250] sm:$0xff]   ;;  %310 = vst [vmem:[%s2220_s26 + $0x138] sm:$0xff] %v309_v39   ;;  %v321_v42 = vld [vmem:[%s2215_s25 + $0x258] sm:$0xff]  }
  0x27   : > { %314 = vst [vmem:[%s2220_s26 + $0x140] sm:$0xff] %v313_v40   ;;  %318 = vst [vmem:[%s2220_s26 + $0x148] sm:$0xff] %v317_v41   ;;  %v325_v43 = vld [vmem:[%s2215_s25 + $0x260] sm:$0xff]  }
  0x28   : > { %322 = vst [vmem:[%s2220_s26 + $0x150] sm:$0xff] %v321_v42   ;;  %326 = vst [vmem:[%s2220_s26 + $0x158] sm:$0xff] %v325_v43  }
  0x29 PF: > { %p1788_p5 = scmp.ge.s32.totalorder %s2158_s14, 1  ;;  %p526_p6 = scmp.lt.s32.totalorder %s2158_s14, 3 }
  0x2b   : > { %p527_p7 = pnand %p1788_p5, %p526_p6 }
  0x2c   : > { %v2091_v44 = vld [vmem:[%s2745_s1] sm:$0x1f] (!%p527_p7)   ;;  %vm1012_vm0 = vcmask (!%p527_p7), 1043456   ;;  %vm1013_vm1 = vcmask (!%p527_p7), 1044480   ;;  %s533_s29 = sand.u32 (!%p527_p7), 1, %s2150_s12   ;;  %v2160_v45 = vmov (!%p527_p7), 65535  }
  0x2d   : > { %530 = sbr.rel (%p527_p7) target bundleno = 364 (0x16c), region = 69  ;;  %v1014_v46 = vsel (!%p527_p7), %vm1012_vm0, 4294967295, %v2160_v45  ;;  %vm879_vm2 = vcmask (!%p527_p7), 72704   ;;  %vm1404_vm3 = vcmask (!%p527_p7), 523264   ;;  %vm1698_vm4 = vcmask (!%p527_p7), 519168  }
  0x2e   : > { %s2065_s30 = smul.u32 (!%p527_p7), 352, %s533_s29  ;;  %v1015_v47 = vsel (!%p527_p7), %vm1013_vm1, %v1014_v46, 0 }
  0x2f   : > { %v1017_v48 = vand.u32 (!%p527_p7), %v2091_v44, %v1015_v47  ;;  %s2425_s5 = smul.u32 (!%p527_p7), 22, %s1783_s15 }
  0x30   : > { %s2313_s4 = scalar_lea.vmem (!%p527_p7), [#allocation2], %s2065_s30 }
  0x31   : > { %v2092_v49 = vld [vmem:[%s2313_s4] sm:$0xff] (!%p527_p7)   ;;  %1972 = vmatprep.subr.bf16.mxu0 (!%p527_p7), %v1017_v48  ;;  %2062 = vmatprep.subr.bf16.mxu1 (!%p527_p7), %v1017_v48  ;;  %v2093_v50 = vld [vmem:[%s2313_s4 + $0x8] sm:$0xff] (!%p527_p7)   ;;  %v2094_v51 = vld [vmem:[%s2313_s4 + $0xb0] sm:$0xff] (!%p527_p7)   ;;  %p558_p8 = scmp.lt.s32.totalorder (!%p527_p7), %s2425_s5, 43 }
  0x32   : > { %1973 = vmatpush3.bf16.msra.mxu0 (!%p527_p7), %v1017_v48  ;;  %2063 = vmatpush3.bf16.msra.mxu1 (!%p527_p7), %v1017_v48  ;;  %v2095_v52 = vld [vmem:[%s2313_s4 + $0xb8] sm:$0xff] (!%p527_p7)   ;;  %v2096_v53 = vld [vmem:[%s2313_s4 + $0x10] sm:$0xff] (!%p527_p7)   ;;  %v2098_v54 = vld [vmem:[%s2313_s4 + $0xc0] sm:$0xff] (!%p527_p7)  }
  0x33   : > { %1974 = vmatprep.mubr.msk.bf16.mxu0 (!%p527_p7), %vm879_vm2, %v2092_v49  ;;  %2018 = vmatprep.mubr.msk.bf16.mxu1 (!%p527_p7), %vm879_vm2, %v2094_v51  ;;  %v2097_v55 = vld [vmem:[%s2313_s4 + $0x18] sm:$0xff] (!%p527_p7)   ;;  %v2099_v56 = vld [vmem:[%s2313_s4 + $0xc8] sm:$0xff] (!%p527_p7)   ;;  %v2100_v57 = vld [vmem:[%s2313_s4 + $0x20] sm:$0xff] (!%p527_p7)  }
  0x34   : > { %v2102_v58 = vld [vmem:[%s2313_s4 + $0xd0] sm:$0xff]   ;;  %v2101_v59 = vld [vmem:[%s2313_s4 + $0x28] sm:$0xff]   ;;  %v2103_v60 = vld [vmem:[%s2313_s4 + $0xd8] sm:$0xff]   ;;  %s2752_s5 = smov (!%p558_p8, %s2425_s5), 43 }
  0x35   : > { %1975 = vmatmul.mubr.msk.bf16.vlgmr.msra.gmra.mrb[0].mxu0 %vm879_vm2, %v2093_v50  ;;  %2019 = vmatmul.mubr.msk.bf16.vlgmr.msra.gmra.mrb[0].mxu1 %vm879_vm2, %v2095_v52  ;;  %v2104_v61 = vld [vmem:[%s2313_s4 + $0x30] sm:$0xff]   ;;  %v2106_v62 = vld [vmem:[%s2313_s4 + $0xe0] sm:$0xff]   ;;  %v2105_v63 = vld [vmem:[%s2313_s4 + $0x38] sm:$0xff]   ;;  %s1789_s8 = sshll.u32 %s2752_s5, 2 }
  0x36   : > { %1978 = vmatprep.mubr.msk.bf16.mxu0 %vm879_vm2, %v2096_v53  ;;  %2022 = vmatprep.mubr.msk.bf16.mxu1 %vm879_vm2, %v2098_v54  ;;  %v2107_v0 = vld [vmem:[%s2313_s4 + $0xe8] sm:$0xff]   ;;  %v2108_v1 = vld [vmem:[%s2313_s4 + $0x40] sm:$0xff]   ;;  %v2110_v2 = vld [vmem:[%s2313_s4 + $0xf0] sm:$0xff]   ;;  %s2565_s11 = scalar_lea.vmem %s2747_s3, %s1789_s8 }
  0x37   : > { %v2109_v3 = vld [vmem:[%s2313_s4 + $0x48] sm:$0xff]   ;;  %v2111_v4 = vld [vmem:[%s2313_s4 + $0xf8] sm:$0xff]   ;;  %v2112_v5 = vld [vmem:[%s2313_s4 + $0x50] sm:$0xff]  }
  0x38   : > { %v2114_v6 = vld [vmem:[%s2313_s4 + $0x100] sm:$0xff]   ;;  %v2113_v7 = vld [vmem:[%s2313_s4 + $0x58] sm:$0xff]   ;;  %v2115_v8 = vld [vmem:[%s2313_s4 + $0x108] sm:$0xff]  }
  0x39   : > { %v2116_v9 = vld [vmem:[%s2313_s4 + $0x60] sm:$0xff]   ;;  %v2118_v10 = vld [vmem:[%s2313_s4 + $0x110] sm:$0xff]   ;;  %v2117_v11 = vld [vmem:[%s2313_s4 + $0x68] sm:$0xff]  }
  0x3a   : > { %v2119_v12 = vld [vmem:[%s2313_s4 + $0x118] sm:$0xff]   ;;  %v2120_v13 = vld [vmem:[%s2313_s4 + $0x70] sm:$0xff]   ;;  %v2122_v14 = vld [vmem:[%s2313_s4 + $0x120] sm:$0xff]  }
  0x3b   : > { %v2121_v15 = vld [vmem:[%s2313_s4 + $0x78] sm:$0xff]   ;;  %v2123_v16 = vld [vmem:[%s2313_s4 + $0x128] sm:$0xff]   ;;  %v2124_v17 = vld [vmem:[%s2313_s4 + $0x80] sm:$0xff]  }
  0x3c   : > { %v2126_v18 = vld [vmem:[%s2313_s4 + $0x130] sm:$0xff]   ;;  %v2125_v19 = vld [vmem:[%s2313_s4 + $0x88] sm:$0xff]   ;;  %v2127_v20 = vld [vmem:[%s2313_s4 + $0x138] sm:$0xff]  }
  0x3d   : > { %1979 = vmatmul.mubr.msk.bf16.gmra.mrb[4].mxu0 %vm879_vm2, %v2097_v55  ;;  %2023 = vmatmul.mubr.msk.bf16.gmra.mrb[4].mxu1 %vm879_vm2, %v2099_v56  ;;  %v2128_v21 = vld [vmem:[%s2313_s4 + $0x90] sm:$0xff]   ;;  %v2130_v22 = vld [vmem:[%s2313_s4 + $0x140] sm:$0xff]   ;;  %v2129_v23 = vld [vmem:[%s2313_s4 + $0x98] sm:$0xff]  }
  0x3e   : > { %1982 = vmatprep.mubr.msk.bf16.mxu0 %vm879_vm2, %v2100_v57  ;;  %2026 = vmatprep.mubr.msk.bf16.mxu1 %vm879_vm2, %v2102_v58  ;;  %v2131_v24 = vld [vmem:[%s2313_s4 + $0x148] sm:$0xff]   ;;  %v2132_v25 = vld [vmem:[%s2313_s4 + $0xa0] sm:$0xff]   ;;  %v2134_v26 = vld [vmem:[%s2313_s4 + $0x150] sm:$0xff]  }
  0x3f   : > { %v2133_v27 = vld [vmem:[%s2313_s4 + $0xa8] sm:$0xff]   ;;  %v2135_v28 = vld [vmem:[%s2313_s4 + $0x158] sm:$0xff]  }
  0x45   : > { %1983 = vmatmul.mubr.msk.bf16.gmra.mrb[8].mxu0 %vm879_vm2, %v2101_v59  ;;  %2027 = vmatmul.mubr.msk.bf16.gmra.mrb[8].mxu1 %vm879_vm2, %v2103_v60 }
  0x46   : > { %1986 = vmatprep.mubr.msk.bf16.mxu0 %vm879_vm2, %v2104_v61  ;;  %2030 = vmatprep.mubr.msk.bf16.mxu1 %vm879_vm2, %v2106_v62 }
  0x4d   : > { %1987 = vmatmul.mubr.msk.bf16.gmra.mrb[12].mxu0 %vm879_vm2, %v2105_v63  ;;  %2031 = vmatmul.mubr.msk.bf16.gmra.mrb[12].mxu1 %vm879_vm2, %v2107_v0 }
  0x4e   : > { %1990 = vmatprep.mubr.msk.bf16.mxu0 %vm879_vm2, %v2108_v1  ;;  %2034 = vmatprep.mubr.msk.bf16.mxu1 %vm879_vm2, %v2110_v2 }
  0x55   : > { %1991 = vmatmul.mubr.msk.bf16.gmra.mrb[16].mxu0 %vm879_vm2, %v2109_v3  ;;  %2035 = vmatmul.mubr.msk.bf16.gmra.mrb[16].mxu1 %vm879_vm2, %v2111_v4 }
  0x56   : > { %1994 = vmatprep.mubr.msk.bf16.mxu0 %vm879_vm2, %v2112_v5  ;;  %2038 = vmatprep.mubr.msk.bf16.mxu1 %vm879_vm2, %v2114_v6 }
  0x5d   : > { %1995 = vmatmul.mubr.msk.bf16.gmra.mrb[20].mxu0 %vm879_vm2, %v2113_v7  ;;  %2039 = vmatmul.mubr.msk.bf16.gmra.mrb[20].mxu1 %vm879_vm2, %v2115_v8 }
  0x5e   : > { %1998 = vmatprep.mubr.msk.bf16.mxu0 %vm879_vm2, %v2116_v9  ;;  %2042 = vmatprep.mubr.msk.bf16.mxu1 %vm879_vm2, %v2118_v10 }
  0x65   : > { %1999 = vmatmul.mubr.msk.bf16.gmra.mrb[24].mxu0 %vm879_vm2, %v2117_v11  ;;  %2043 = vmatmul.mubr.msk.bf16.gmra.mrb[24].mxu1 %vm879_vm2, %v2119_v12 }
  0x66   : > { %2002 = vmatprep.mubr.msk.bf16.mxu0 %vm879_vm2, %v2120_v13  ;;  %2046 = vmatprep.mubr.msk.bf16.mxu1 %vm879_vm2, %v2122_v14 }
  0x6d   : > { %2003 = vmatmul.mubr.msk.bf16.gmra.mrb[28].mxu0 %vm879_vm2, %v2121_v15  ;;  %2047 = vmatmul.mubr.msk.bf16.gmra.mrb[28].mxu1 %vm879_vm2, %v2123_v16 }
  0x6e   : > { %2006 = vmatprep.mubr.msk.bf16.mxu0 %vm879_vm2, %v2124_v17  ;;  %2050 = vmatprep.mubr.msk.bf16.mxu1 %vm879_vm2, %v2126_v18 }
  0x75   : > { %2007 = vmatmul.mubr.msk.bf16.gmra.mrb[32].mxu0 %vm879_vm2, %v2125_v19  ;;  %2051 = vmatmul.mubr.msk.bf16.gmra.mrb[32].mxu1 %vm879_vm2, %v2127_v20 }
  0x76   : > { %2010 = vmatprep.mubr.msk.bf16.mxu0 %vm879_vm2, %v2128_v21  ;;  %2054 = vmatprep.mubr.msk.bf16.mxu1 %vm879_vm2, %v2130_v22 }
  0x7d   : > { %2011 = vmatmul.mubr.msk.bf16.gmra.mrb[36].mxu0 %vm879_vm2, %v2129_v23  ;;  %2055 = vmatmul.mubr.msk.bf16.gmra.mrb[36].mxu1 %vm879_vm2, %v2131_v24 }
  0x7e   : > { %2014 = vmatprep.mubr.msk.bf16.mxu0 %vm879_vm2, %v2132_v25  ;;  %2058 = vmatprep.mubr.msk.bf16.mxu1 %vm879_vm2, %v2134_v26 }
  0x85   : > { %2015 = vmatmul.mubr.msk.bf16.gmra.mrb[40].mxu0 %vm879_vm2, %v2133_v27  ;;  %2059 = vmatmul.mubr.msk.bf16.gmra.mrb[40].mxu1 %vm879_vm2, %v2135_v28 }
 0x108   : > { %v1976_v29 = vpop.f32.mrb[0].mxu0  ;;  %v2020_v30 = vpop.f32.mrb[0].mxu1 }
 0x109   : > { %v1053_v31 = vpop.f32.mrb[1].mxu0  ;;  %v1229_v32 = vpop.f32.mrb[1].mxu1  ;;  %v2428_v5 = vsel %vm1404_vm3, %v1976_v29, -inf  ;;  %v2432_v7 = vsel %vm1404_vm3, %v2020_v30, -inf }
 0x10a   : > { %v1977_v33 = vpop.f32.mrb[2].mxu0  ;;  %v2021_v34 = vpop.f32.mrb[2].mxu1  ;;  %v1405_v6 = vsel %vm1404_vm3, %v1053_v31, -inf  ;;  %v1408_v8 = vsel %vm1404_vm3, %v1229_v32, -inf }
 0x10b   : > { %v1056_v35 = vpop.f32.mrb[3].mxu0  ;;  %v1232_v36 = vpop.f32.mrb[3].mxu1  ;;  %v2436_v9 = vsel %vm1404_vm3, %v1977_v33, -inf  ;;  %v2440_v11 = vsel %vm1404_vm3, %v2021_v34, -inf }
 0x10c   : > { %v1412_v10 = vsel %vm1404_vm3, %v1056_v35, -inf  ;;  %v1415_v12 = vsel %vm1404_vm3, %v1232_v36, -inf }
 0x110   : > { %v1980_v37 = vpop.f32.mrb[4].mxu0  ;;  %v2024_v38 = vpop.f32.mrb[4].mxu1 }
 0x111   : > { %v1069_v39 = vpop.f32.mrb[5].mxu0  ;;  %v1245_v40 = vpop.f32.mrb[5].mxu1  ;;  %v2445_v13 = vsel %vm1404_vm3, %v1980_v37, -inf  ;;  %v2451_v15 = vsel %vm1404_vm3, %v2024_v38, -inf }
 0x112   : > { %v1981_v41 = vpop.f32.mrb[6].mxu0  ;;  %v2025_v42 = vpop.f32.mrb[6].mxu1  ;;  %v2448_v14 = vsel %vm1404_vm3, %v1069_v39, -inf  ;;  %v2454_v16 = vsel %vm1404_vm3, %v1245_v40, -inf }
 0x113   : > { %v1072_v43 = vpop.f32.mrb[7].mxu0  ;;  %v1248_v44 = vpop.f32.mrb[7].mxu1  ;;  %v2457_v19 = vsel %vm1404_vm3, %v1981_v41, -inf  ;;  %v2463_v21 = vsel %vm1404_vm3, %v2025_v42, -inf }
 0x114   : > { %v2460_v20 = vsel %vm1404_vm3, %v1072_v43, -inf  ;;  %v2471_v25 = vsel %vm1404_vm3, %v1248_v44, -inf }
 0x118   : > { %v1984_v45 = vpop.f32.mrb[8].mxu0  ;;  %v2028_v46 = vpop.f32.mrb[8].mxu1 }
 0x119   : > { %v1085_v47 = vpop.f32.mrb[9].mxu0  ;;  %v1261_v48 = vpop.f32.mrb[9].mxu1  ;;  %v2474_v26 = vsel %vm1404_vm3, %v1984_v45, -inf  ;;  %v2477_v27 = vsel %vm1404_vm3, %v2028_v46, -inf  ;;  %v2517_v45 = vld [vmem:[%s2746_s2] ss:$0 sm:$0xff] }
 0x11a   : > { %v1985_v49 = vpop.f32.mrb[10].mxu0  ;;  %v2029_v50 = vpop.f32.mrb[10].mxu1  ;;  %v2480_v31 = vsel %vm1404_vm3, %v1085_v47, -inf  ;;  %v2483_v32 = vsel %vm1404_vm3, %v1261_v48, -inf }
 0x11b   : > { %v1088_v51 = vpop.f32.mrb[11].mxu0  ;;  %v1264_v52 = vpop.f32.mrb[11].mxu1  ;;  %v2492_v37 = vsel %vm1404_vm3, %v1985_v49, -inf  ;;  %v2495_v38 = vsel %vm1404_vm3, %v2029_v50, -inf }
 0x11c   : > { %v2503_v41 = vsel %vm1404_vm3, %v1088_v51, -inf  ;;  %v2506_v42 = vsel %vm1404_vm3, %v1264_v52, -inf }
 0x120   : > { %v1988_v53 = vpop.f32.mrb[12].mxu0  ;;  %v2032_v54 = vpop.f32.mrb[12].mxu1 }
 0x121   : > { %v1101_v55 = vpop.f32.mrb[13].mxu0  ;;  %v1277_v56 = vpop.f32.mrb[13].mxu1  ;;  %v2509_v43 = vsel %vm1404_vm3, %v1988_v53, -inf  ;;  %v2512_v44 = vsel %vm1404_vm3, %v2032_v54, -inf }
 0x122   : > { %v1989_v57 = vpop.f32.mrb[14].mxu0  ;;  %v2403_v58 = vpop.f32.mrb[14].mxu1  ;;  %v2520_v46 = vsel %vm1404_vm3, %v1101_v55, -inf  ;;  %v2523_v47 = vsel %vm1404_vm3, %v1277_v56, -inf }
 0x123   : > { %v1104_v59 = vpop.f32.mrb[15].mxu0  ;;  %v2405_v60 = vpop.f32.mrb[15].mxu1  ;;  %v2526_v50 = vsel %vm1404_vm3, %v1989_v57, -inf  ;;  %v2533_v52 = vsel %vm1404_vm3, %v2403_v58, -inf }
 0x124   : > { %v2529_v51 = vsel %vm1404_vm3, %v1104_v59, -inf  ;;  %v2538_v54 = vsel %vm1404_vm3, %v2405_v60, -inf }
 0x128   : > { %v2407_v61 = vpop.f32.mrb[16].mxu0  ;;  %v2409_v62 = vpop.f32.mrb[16].mxu1 }
 0x129   : > { %v2411_v63 = vpop.f32.mrb[17].mxu0  ;;  %v2413_v0 = vpop.f32.mrb[17].mxu1  ;;  %v2542_v55 = vsel %vm1404_vm3, %v2407_v61, -inf }
 0x12a   : > { %v2415_v1 = vpop.f32.mrb[18].mxu0  ;;  %v2417_v2 = vpop.f32.mrb[18].mxu1  ;;  %v2548_v58 = vsel %vm1404_vm3, %v2411_v63, -inf  ;;  %v2556_v60 = vsel %vm1404_vm3, %v2413_v0, -inf }
 0x12b   : > { %v2419_v3 = vpop.f32.mrb[19].mxu0  ;;  %v2421_v4 = vpop.f32.mrb[19].mxu1 }
 0x130   : > { %v1996_v17 = vpop.f32.mrb[20].mxu0  ;;  %v2040_v18 = vpop.f32.mrb[20].mxu1 }
 0x131   : > { %v1406_v22 = vsel %vm1404_vm3, %v1996_v17, -inf  ;;  %v2466_v23 = vpop.f32.mrb[21].mxu0  ;;  %v2468_v24 = vpop.f32.mrb[21].mxu1  ;;  %v1410_v33 = vsel %vm1404_vm3, %v2040_v18, -inf }
 0x132   : > { %v1407_v28 = vmax.f32 %v1405_v6, %v1406_v22  ;;  %v1997_v29 = vpop.f32.mrb[22].mxu0  ;;  %v2041_v30 = vpop.f32.mrb[22].mxu1 }
 0x133   : > { %v1413_v34 = vsel %vm1404_vm3, %v1997_v29, -inf  ;;  %v2487_v35 = vpop.f32.mrb[23].mxu0  ;;  %v2489_v36 = vpop.f32.mrb[23].mxu1  ;;  %v1417_v53 = vsel %vm1404_vm3, %v2041_v30, -inf }
 0x134   : > { %v1409_v39 = vmax.f32 %v1407_v28, %v1408_v8  ;;  %v1414_v40 = vmax.f32 %v1412_v10, %v1413_v34  ;;  %v2552_v8 = vsel %vm1404_vm3, %v2409_v62, -inf }
 0x136   : > { %v1411_v48 = vmax.f32 %v1409_v39, %v1410_v33  ;;  %v1416_v49 = vmax.f32 %v1414_v40, %v1415_v12 }
 0x138   : > { %v1566_v56 = vadd.f32 %v2517_v45, %v1411_v48  ;;  %v1418_v57 = vmax.f32 %v1416_v49, %v1417_v53  ;;  %v2000_v59 = vpop.f32.mrb[24].mxu0  ;;  %v2044_v6 = vpop.f32.mrb[24].mxu1  ;;  %v2575_v53 = vsel %vm1404_vm3, %v2415_v1, -inf  ;;  %v2589_v1 = vsel %vm1404_vm3, %v2421_v4, -inf }
 0x139   : > { %v1434_v61 = vsel %vm1404_vm3, %v2000_v59, -inf  ;;  %v1149_v10 = vpop.f32.mrb[25].mxu0  ;;  %v1325_v12 = vpop.f32.mrb[25].mxu1  ;;  %v1438_v0 = vsel %vm1404_vm3, %v2044_v6, -inf }
 0x13a   : > { %v1588_v17 = vmax.f32 %v1566_v56, 0.0  ;;  %v1567_v18 = vadd.f32 %v2517_v45, %v1418_v57  ;;  %v1435_v22 = vmax.f32 %v2448_v14, %v1434_v61  ;;  %v1420_v63 = vsel %vm1404_vm3, %v1149_v10, -inf  ;;  %v2001_v28 = vpop.f32.mrb[26].mxu0  ;;  %v2045_v29 = vpop.f32.mrb[26].mxu1 }
 0x13b   : > { %v1421_v62 = vmax.f32 %v2428_v5, %v1420_v63  ;;  %v1441_v30 = vsel %vm1404_vm3, %v2001_v28, -inf  ;;  %v1424_v33 = vsel %vm1404_vm3, %v1325_v12, -inf  ;;  %v1152_v34 = vpop.f32.mrb[27].mxu0  ;;  %v1328_v14 = vpop.f32.mrb[27].mxu1  ;;  %v2579_v5 = vsel %vm1404_vm3, %v2419_v3, -inf }
 0x13c   : > { %v1905_v39 = vpack.c.bf16 %v1588_v17, %v1588_v17  ;;  %v1589_v40 = vmax.f32 %v1567_v18, 0.0  ;;  %v1437_v48 = vmax.f32 %v1435_v22, %v2454_v16  ;;  %v1442_v49 = vmax.f32 %v2460_v20, %v1441_v30 }
 0x13d   : > { %v1423_v56 = vmax.f32 %v1421_v62, %v2432_v7  ;;  %v1427_v57 = vsel %vm1404_vm3, %v1152_v34, -inf  ;;  %v2593_v3 = vsel %vm1404_vm3, %v2466_v23, -inf  ;;  %v1445_v7 = vsel %vm1404_vm3, %v2045_v29, -inf }
 0x13e   : > { %1699 = vst.msk [vmem:[%s2565_s11] sm:$0xf] %vm1698_vm4, %v1905_v39  ;;  %v1906_v59 = vpack.c.bf16 %v1589_v40, %v1589_v40  ;;  %v1439_v6 = vmax.f32 %v1437_v48, %v1438_v0  ;;  %v1428_v16 = vmax.f32 %v2436_v9, %v1427_v57  ;;  %v1444_v20 = vmax.f32 %v1442_v49, %v2471_v25 }
 0x13f   : > { %v1425_v61 = vmax.f32 %v1423_v56, %v1424_v33  ;;  %v2598_v10 = vsel %vm1404_vm3, %v2468_v24, -inf  ;;  %v1431_v23 = vsel %vm1404_vm3, %v1328_v14, -inf }
 0x140   : > { %1700 = vst.msk [vmem:[%s2565_s11 + $0x4] sm:$0xf] %vm1698_vm4, %v1906_v59  ;;  %v1570_v9 = vadd.f32 %v2517_v45, %v1439_v6  ;;  %v1446_v25 = vmax.f32 %v1444_v20, %v1445_v7  ;;  %v1430_v12 = vmax.f32 %v1428_v16, %v2440_v11  ;;  %v2004_v4 = vpop.f32.mrb[28].mxu0  ;;  %v2048_v17 = vpop.f32.mrb[28].mxu1 }
 0x141   : > { %v1568_v18 = vadd.f32 %v2517_v45, %v1425_v61  ;;  %v1462_v22 = vsel %vm1404_vm3, %v2004_v4, -inf  ;;  %v1165_v63 = vpop.f32.mrb[29].mxu0  ;;  %v1466_v28 = vsel %vm1404_vm3, %v2048_v17, -inf  ;;  %v1341_v24 = vpop.f32.mrb[29].mxu1  ;;  %v2624_v4 = vsel %vm1404_vm3, %v2487_v35, -inf }
 0x142   : > { %v1592_v29 = vmax.f32 %v1570_v9, 0.0  ;;  %v1571_v62 = vadd.f32 %v2517_v45, %v1446_v25  ;;  %v1432_v0 = vmax.f32 %v1430_v12, %v1431_v23  ;;  %v1463_v30 = vmax.f32 %v2480_v31, %v1462_v22  ;;  %v2005_v33 = vpop.f32.mrb[30].mxu0  ;;  %v2049_v11 = vpop.f32.mrb[30].mxu1 }
 0x143   : > { %v1590_v34 = vmax.f32 %v1568_v18, 0.0  ;;  %v1448_v39 = vsel %vm1404_vm3, %v1165_v63, -inf  ;;  %v1469_v14 = vsel %vm1404_vm3, %v2005_v33, -inf  ;;  %v1452_v40 = vsel %vm1404_vm3, %v1341_v24, -inf  ;;  %v1168_v48 = vpop.f32.mrb[31].mxu0  ;;  %v1344_v49 = vpop.f32.mrb[31].mxu1 }
 0x144   : > { %v1909_v56 = vpack.c.bf16 %v1592_v29, %v1592_v29  ;;  %v1593_v57 = vmax.f32 %v1571_v62, 0.0  ;;  %v1569_v59 = vadd.f32 %v2517_v45, %v1432_v0  ;;  %v1449_v31 = vmax.f32 %v2445_v13, %v1448_v39 }
 0x145   : > { %v1907_v6 = vpack.c.bf16 %v1590_v34, %v1590_v34  ;;  %v1465_v16 = vmax.f32 %v1463_v30, %v2483_v32  ;;  %v1470_v20 = vmax.f32 %v2503_v41, %v1469_v14  ;;  %v1455_v61 = vsel %vm1404_vm3, %v1168_v48, -inf }
 0x146   : > { %1703 = vst.msk [vmem:[%s2565_s11 + $0x10] sm:$0xf] %vm1698_vm4, %v1909_v56  ;;  %v1910_v7 = vpack.c.bf16 %v1593_v57, %v1593_v57  ;;  %v1591_v9 = vmax.f32 %v1569_v59, 0.0  ;;  %v1451_v25 = vmax.f32 %v1449_v31, %v2451_v15  ;;  %v1456_v12 = vmax.f32 %v2457_v19, %v1455_v61 }
 0x147   : > { %1701 = vst.msk [vmem:[%s2565_s11 + $0x8] sm:$0xf] %vm1698_vm4, %v1907_v6  ;;  %v1467_v13 = vmax.f32 %v1465_v16, %v1466_v28  ;;  %v1472_v32 = vmax.f32 %v1470_v20, %v2506_v42  ;;  %v1473_v41 = vsel %vm1404_vm3, %v2049_v11, -inf  ;;  %v1459_v19 = vsel %vm1404_vm3, %v1344_v49, -inf }
 0x148   : > { %1704 = vst.msk [vmem:[%s2565_s11 + $0x14] sm:$0xf] %vm1698_vm4, %v1910_v7  ;;  %v1908_v17 = vpack.c.bf16 %v1591_v9, %v1591_v9  ;;  %v1453_v18 = vmax.f32 %v1451_v25, %v1452_v40  ;;  %v1458_v15 = vmax.f32 %v1456_v12, %v2463_v21  ;;  %v2008_v23 = vpop.f32.mrb[32].mxu0  ;;  %v2052_v22 = vpop.f32.mrb[32].mxu1 }
 0x149   : > { %v1574_v35 = vadd.f32 %v2517_v45, %v1467_v13  ;;  %v1474_v63 = vmax.f32 %v1472_v32, %v1473_v41  ;;  %v1490_v28 = vsel %vm1404_vm3, %v2008_v23, -inf  ;;  %v1181_v24 = vpop.f32.mrb[33].mxu0  ;;  %v1494_v42 = vsel %vm1404_vm3, %v2052_v22, -inf  ;;  %v1357_v29 = vpop.f32.mrb[33].mxu1 }
 0x14a   : > { %1702 = vst.msk [vmem:[%s2565_s11 + $0xc] sm:$0xf] %vm1698_vm4, %v1908_v17  ;;  %v1572_v62 = vadd.f32 %v2517_v45, %v1453_v18  ;;  %v1460_v0 = vmax.f32 %v1458_v15, %v1459_v19  ;;  %v1491_v21 = vmax.f32 %v2520_v46, %v1490_v28  ;;  %v1476_v30 = vsel %vm1404_vm3, %v1181_v24, -inf  ;;  %v2009_v33 = vpop.f32.mrb[34].mxu0  ;;  %v2053_v11 = vpop.f32.mrb[34].mxu1 }
 0x14b   : > { %v1596_v34 = vmax.f32 %v1574_v35, 0.0  ;;  %v1575_v39 = vadd.f32 %v2517_v45, %v1474_v63  ;;  %v1477_v14 = vmax.f32 %v2474_v26, %v1476_v30  ;;  %v1497_v40 = vsel %vm1404_vm3, %v2009_v33, -inf  ;;  %v1184_v48 = vpop.f32.mrb[35].mxu0  ;;  %v1360_v49 = vpop.f32.mrb[35].mxu1 }
 0x14c   : > { %v1594_v56 = vmax.f32 %v1572_v62, 0.0  ;;  %v1573_v57 = vadd.f32 %v2517_v45, %v1460_v0  ;;  %v1493_v46 = vmax.f32 %v1491_v21, %v2523_v47  ;;  %v1498_v59 = vmax.f32 %v2529_v51, %v1497_v40 }
 0x14d   : > { %v1913_v31 = vpack.c.bf16 %v1596_v34, %v1596_v34  ;;  %v1597_v6 = vmax.f32 %v1575_v39, 0.0  ;;  %v1479_v16 = vmax.f32 %v1477_v14, %v2477_v27  ;;  %v1480_v20 = vsel %vm1404_vm3, %v1357_v29, -inf }
 0x14e   : > { %v1911_v26 = vpack.c.bf16 %v1594_v56, %v1594_v56  ;;  %v1595_v61 = vmax.f32 %v1573_v57, 0.0  ;;  %v1495_v7 = vmax.f32 %v1493_v46, %v1494_v42  ;;  %v1483_v9 = vsel %vm1404_vm3, %v1184_v48, -inf }
 0x14f   : > { %1707 = vst.msk [vmem:[%s2565_s11 + $0x20] sm:$0xf] %vm1698_vm4, %v1913_v31  ;;  %v1914_v25 = vpack.c.bf16 %v1597_v6, %v1597_v6  ;;  %v1481_v12 = vmax.f32 %v1479_v16, %v1480_v20  ;;  %v1484_v47 = vmax.f32 %v2492_v37, %v1483_v9  ;;  %v1500_v51 = vmax.f32 %v1498_v59, %v2538_v54 }
 0x150   : > { %1705 = vst.msk [vmem:[%s2565_s11 + $0x18] sm:$0xf] %vm1698_vm4, %v1911_v26  ;;  %v1912_v27 = vpack.c.bf16 %v1595_v61, %v1595_v61  ;;  %v1578_v13 = vadd.f32 %v2517_v45, %v1495_v7  ;;  %v1501_v32 = vsel %vm1404_vm3, %v2053_v11, -inf  ;;  %v1487_v41 = vsel %vm1404_vm3, %v1360_v49, -inf  ;;  %v2012_v17 = vpop.f32.mrb[36].mxu0  ;;  %v2056_v18 = vpop.f32.mrb[36].mxu1 }
 0x151   : > { %1708 = vst.msk [vmem:[%s2565_s11 + $0x24] sm:$0xf] %vm1698_vm4, %v1914_v25  ;;  %v1576_v15 = vadd.f32 %v2517_v45, %v1481_v12  ;;  %v1502_v19 = vmax.f32 %v1500_v51, %v1501_v32  ;;  %v1486_v37 = vmax.f32 %v1484_v47, %v2495_v38  ;;  %v1518_v54 = vsel %vm1404_vm3, %v2012_v17, -inf  ;;  %v1197_v23 = vpop.f32.mrb[37].mxu0  ;;  %v1373_v22 = vpop.f32.mrb[37].mxu1 }
 0x152   : > { %1706 = vst.msk [vmem:[%s2565_s11 + $0x1c] sm:$0xf] %vm1698_vm4, %v1912_v27  ;;  %v1600_v35 = vmax.f32 %v1578_v13, 0.0  ;;  %v1519_v63 = vmax.f32 %v2548_v58, %v1518_v54  ;;  %v1504_v28 = vsel %vm1404_vm3, %v1197_v23, -inf  ;;  %v1522_v24 = vsel %vm1404_vm3, %v2056_v18, -inf  ;;  %v2013_v42 = vpop.f32.mrb[38].mxu0 }
 0x153   : > { %v2057_v29 = vpop.f32.mrb[38].mxu1  ;;  %v1598_v62 = vmax.f32 %v1576_v15, 0.0  ;;  %v1579_v0 = vadd.f32 %v2517_v45, %v1502_v19  ;;  %v1488_v38 = vmax.f32 %v1486_v37, %v1487_v41  ;;  %v1505_v21 = vmax.f32 %v2509_v43, %v1504_v28  ;;  %v1200_v30 = vpop.f32.mrb[39].mxu0 }
 0x154   : > { %v1376_v33 = vpop.f32.mrb[39].mxu1  ;;  %v1917_v11 = vpack.c.bf16 %v1600_v35, %v1600_v35  ;;  %v1521_v34 = vmax.f32 %v1519_v63, %v2556_v60  ;;  %v1525_v58 = vsel %vm1404_vm3, %v2013_v42, -inf  ;;  %v1508_v39 = vsel %vm1404_vm3, %v1373_v22, -inf }
 0x155   : > { %v1915_v14 = vpack.c.bf16 %v1598_v62, %v1598_v62  ;;  %v1601_v40 = vmax.f32 %v1579_v0, 0.0  ;;  %v1577_v48 = vadd.f32 %v2517_v45, %v1488_v38  ;;  %v1526_v49 = vmax.f32 %v2579_v5, %v1525_v58 }
 0x156   : > { %v1555_v56 = vsel %vm1404_vm3, %v2489_v36, -inf  ;;  %1711 = vst.msk [vmem:[%s2565_s11 + $0x30] sm:$0xf] %vm1698_vm4, %v1917_v11  ;;  %v1523_v43 = vmax.f32 %v1521_v34, %v1522_v24  ;;  %v1507_v57 = vmax.f32 %v1505_v21, %v2512_v44  ;;  %v1511_v60 = vsel %vm1404_vm3, %v1200_v30, -inf }
 0x157   : > { %1709 = vst.msk [vmem:[%s2565_s11 + $0x28] sm:$0xf] %vm1698_vm4, %v1915_v14  ;;  %v1918_v46 = vpack.c.bf16 %v1601_v40, %v1601_v40  ;;  %v1599_v59 = vmax.f32 %v1577_v48, 0.0  ;;  %v1512_v31 = vmax.f32 %v2526_v50, %v1511_v60  ;;  %v1528_v6 = vmax.f32 %v1526_v49, %v2589_v1 }
 0x158   : > { %v1582_v5 = vadd.f32 %v2517_v45, %v1523_v43  ;;  %v1509_v16 = vmax.f32 %v1507_v57, %v1508_v39  ;;  %v1529_v36 = vsel %vm1404_vm3, %v2057_v29, -inf  ;;  %v1515_v20 = vsel %vm1404_vm3, %v1376_v33, -inf  ;;  %v2016_v26 = vpop.f32.mrb[40].mxu0  ;;  %v2060_v44 = vpop.f32.mrb[40].mxu1 }
 0x159   : > { %1712 = vst.msk [vmem:[%s2565_s11 + $0x34] sm:$0xf] %vm1698_vm4, %v1918_v46  ;;  %v1916_v61 = vpack.c.bf16 %v1599_v59, %v1599_v59  ;;  %v1530_v7 = vmax.f32 %v1528_v6, %v1529_v36  ;;  %v1514_v9 = vmax.f32 %v1512_v31, %v2533_v52  ;;  %v1546_v50 = vsel %vm1404_vm3, %v2016_v26, -inf  ;;  %v1213_v25 = vpop.f32.mrb[41].mxu0  ;;  %v1389_v1 = vpop.f32.mrb[41].mxu1 }
 0x15a   : > { %v1604_v12 = vmax.f32 %v1582_v5, 0.0  ;;  %v1580_v47 = vadd.f32 %v2517_v45, %v1509_v16  ;;  %v1547_v51 = vmax.f32 %v2593_v3, %v1546_v50  ;;  %v1532_v27 = vsel %vm1404_vm3, %v1213_v25, -inf  ;;  %v2017_v13 = vpop.f32.mrb[42].mxu0  ;;  %v2061_v32 = vpop.f32.mrb[42].mxu1 }
 0x15b   : > { %1710 = vst.msk [vmem:[%s2565_s11 + $0x2c] sm:$0xf] %vm1698_vm4, %v1916_v61  ;;  %v1583_v41 = vadd.f32 %v2517_v45, %v1530_v7  ;;  %v1516_v17 = vmax.f32 %v1514_v9, %v1515_v20  ;;  %v1533_v52 = vmax.f32 %v2542_v55, %v1532_v27  ;;  %v1550_v18 = vsel %vm1404_vm3, %v2060_v44, -inf  ;;  %v1216_v15 = vpop.f32.mrb[43].mxu0  ;;  %v1392_v19 = vpop.f32.mrb[43].mxu1 }
 0x15c   : > { %v1921_v37 = vpack.c.bf16 %v1604_v12, %v1604_v12  ;;  %v1602_v54 = vmax.f32 %v1580_v47, 0.0  ;;  %v1549_v3 = vmax.f32 %v1547_v51, %v2598_v10  ;;  %v1553_v23 = vsel %vm1404_vm3, %v2017_v13, -inf }
 0x15d   : > { %v1605_v22 = vmax.f32 %v1583_v41, 0.0  ;;  %v1581_v35 = vadd.f32 %v2517_v45, %v1516_v17  ;;  %v1554_v63 = vmax.f32 %v2624_v4, %v1553_v23  ;;  %v1535_v28 = vmax.f32 %v1533_v52, %v2552_v8 }
 0x15e   : > { %1715 = vst.msk [vmem:[%s2565_s11 + $0x40] sm:$0xf] %vm1698_vm4, %v1921_v37  ;;  %v1919_v55 = vpack.c.bf16 %v1602_v54, %v1602_v54  ;;  %v1551_v24 = vmax.f32 %v1549_v3, %v1550_v18  ;;  %v1536_v42 = vsel %vm1404_vm3, %v1389_v1, -inf  ;;  %v1539_v29 = vsel %vm1404_vm3, %v1216_v15, -inf }
 0x15f   : > { %v1922_v10 = vpack.c.bf16 %v1605_v22, %v1605_v22  ;;  %v1603_v62 = vmax.f32 %v1581_v35, 0.0  ;;  %v1537_v0 = vmax.f32 %v1535_v28, %v1536_v42  ;;  %v1540_v38 = vmax.f32 %v2575_v53, %v1539_v29 }
 0x160   : > { %v1541_v21 = vsel %vm1404_vm3, %v2417_v2, -inf  ;;  %1713 = vst.msk [vmem:[%s2565_s11 + $0x38] sm:$0xf] %vm1698_vm4, %v1919_v55  ;;  %v1586_v8 = vadd.f32 %v2517_v45, %v1551_v24  ;;  %v1556_v4 = vmax.f32 %v1554_v63, %v1555_v56  ;;  %v1557_v11 = vsel %vm1404_vm3, %v2061_v32, -inf }
 0x161   : > { %1716 = vst.msk [vmem:[%s2565_s11 + $0x44] sm:$0xf] %vm1698_vm4, %v1922_v10  ;;  %v1920_v30 = vpack.c.bf16 %v1603_v62, %v1603_v62  ;;  %v1584_v33 = vadd.f32 %v2517_v45, %v1537_v0  ;;  %v1542_v34 = vmax.f32 %v1540_v38, %v1541_v21  ;;  %v1543_v2 = vsel %vm1404_vm3, %v1392_v19, -inf }
 0x162   : > { %v1608_v58 = vmax.f32 %v1586_v8, 0.0  ;;  %v1558_v53 = vmax.f32 %v1556_v4, %v1557_v11 }
 0x163   : > { %1714 = vst.msk [vmem:[%s2565_s11 + $0x3c] sm:$0xf] %vm1698_vm4, %v1920_v30  ;;  %v1606_v39 = vmax.f32 %v1584_v33, 0.0  ;;  %v1544_v14 = vmax.f32 %v1542_v34, %v1543_v2 }
 0x164   : > { %v1925_v40 = vpack.c.bf16 %v1608_v58, %v1608_v58  ;;  %v1587_v48 = vadd.f32 %v2517_v45, %v1558_v53 }
 0x165   : > { %v1923_v49 = vpack.c.bf16 %v1606_v39, %v1606_v39  ;;  %v1585_v56 = vadd.f32 %v2517_v45, %v1544_v14 }
 0x166   : > { %1719 = vst.msk [vmem:[%s2565_s11 + $0x50] sm:$0xf] %vm1698_vm4, %v1925_v40  ;;  %v1609_v43 = vmax.f32 %v1587_v48, 0.0 }
 0x167   : > { %1717 = vst.msk [vmem:[%s2565_s11 + $0x48] sm:$0xf] %vm1698_vm4, %v1923_v49  ;;  %v1607_v57 = vmax.f32 %v1585_v56, 0.0 }
 0x168   : > { %v1926_v60 = vpack.c.bf16 %v1609_v43, %v1609_v43 }
 0x169   : > { %v1924_v46 = vpack.c.bf16 %v1607_v57, %v1607_v57 }
 0x16a   : > { %1720 = vst.msk [vmem:[%s2565_s11 + $0x54] sm:$0xf] %vm1698_vm4, %v1926_v60 }
 0x16b   : > { %1718 = vst.msk [vmem:[%s2565_s11 + $0x4c] sm:$0xf] %vm1698_vm4, %v1924_v46 }
 0x16c PF: > { %p10_p9 = scmp.ge.s32.totalorder %s2198_s16, 4   ;;  %s2748_s12 = smov %s2154_s13 }
 0x16d   : > { %s2749_s13 = smov %s2207_s19  ;;  %s2750_s14 = smov %s2198_s16 }
 0x16e   :  { %12 = sbr.rel (!%p10_p9) target bundleno = 2 (0x2), region = 108 }

// kernel: cnn_forward.4
= control target key start
LH: loop header
LB: loop body
LE: loop exit
PB: predicated region body
PF: predicated region fallthrough
CT: control target
= control target key end

     0   :  { %s1746_s12 = smov 0   ;;  %s1748_s13 = smov 0   ;;  %s2083_s0 = inlined_call_operand.vmem [shape: bf16[4,64,576], index: 0, kind: input, shape index: {}]   ;;  %s2084_s1 = inlined_call_operand.vmem [shape: bf16[576,128], index: 1, kind: input, shape index: {}]   ;;  %s2085_s2 = inlined_call_operand.vmem [shape: f32[1,128], index: 2, kind: input, shape index: {}]   ;;  %s2086_s3 = inlined_call_operand.vmem [shape: bf16[64,128], index: 3, kind: output, shape index: {}]  }
   0x1   :  { %s1750_s14 = smov 0  }
   0x2 LB: > { %s1263_s15 = sadd.s32 4294967295, %s1724_s14   ;;  %s1763_s16 = sadd.s32 1, %s1724_s14   ;;  %s1724_s14 = sphi %s1750_s14, %s2089_s14   ;;  %s1720_s13 = sphi %s1748_s13, %s2088_s13   ;;  %s1716_s12 = sphi %s1746_s12, %s2087_s12  }
   0x3   : > { %s17_s17 = ssub.s32 %s1724_s14, %s1763_s16  ;;  %s20_s18 = sadd.s32 1, %s1720_s13 }
   0x4   : > { %p18_p0 = scmp.eq.s32.totalorder %s17_s17, 0  ;;  %p27_p1 = scmp.ne.s32.totalorder %s1720_s13, %s1716_s12 }
   0x5   : > { %p28_p2 = scmp.eq.s32.totalorder %s1724_s14, 0  ;;  %p1266_p4 = scmp.ge.s32.totalorder %s1724_s14, 2 }
   0x6   : > { %s1772_s19 = scalar_select %p18_p0, %s1720_s13, %s20_s18  }
   0x7   : > { %p29_p3 = por %p28_p2, %p27_p1  ;;  %127 = sbr.rel (%p1266_p4) target bundleno = 45 (0x2d), region = 24 }
   0xe   : > { %130 = sbr.rel (!%p29_p3) target bundleno = 45 (0x2d), region = 28  ;;  %s132_s20 = sand.u32 (%p29_p3), 1, %s1720_s13  }
   0xf   : > { %s1584_s21 = smul.u32 (%p29_p3), 80, %s1724_s14 }
  0x10   : > { %s1583_s22 = smul.u32 (%p29_p3), 320, %s132_s20 }
  0x11   : > { %s1780_s25 = scalar_lea.vmem (%p29_p3), %s2083_s0, %s1584_s21 }
  0x12   : > { %v153_v0 = vld [vmem:[%s1780_s25] sm:$0xff] (%p29_p3)  ;;  %v155_v1 = vld [vmem:[%s1780_s25 + $0x8] sm:$0xff] (%p29_p3)  ;;  %v157_v2 = vld [vmem:[%s1780_s25 + $0x14] sm:$0xff] (%p29_p3)  ;;  %s1785_s26 = scalar_lea.vmem (%p29_p3), [#allocation2], %s1583_s22 }
  0x13   : > { %154 = vst [vmem:[%s1785_s26] sm:$0xff] (%p29_p3), %v153_v0  ;;  %156 = vst [vmem:[%s1785_s26 + $0x8] sm:$0xff] (%p29_p3), %v155_v1  ;;  %v159_v3 = vld [vmem:[%s1780_s25 + $0x1c] sm:$0xff] (%p29_p3)  ;;  %v161_v4 = vld [vmem:[%s1780_s25 + $0x28] sm:$0xff] (%p29_p3) }
  0x14   : > { %158 = vst [vmem:[%s1785_s26 + $0x14] sm:$0xff] (%p29_p3), %v157_v2  ;;  %v163_v5 = vld [vmem:[%s1780_s25 + $0x30] sm:$0xff] (%p29_p3)  ;;  %160 = vst [vmem:[%s1785_s26 + $0x1c] sm:$0xff] (%p29_p3), %v159_v3  ;;  %v165_v6 = vld [vmem:[%s1780_s25 + $0x3c] sm:$0xff] (%p29_p3) }
  0x15   : > { %162 = vst [vmem:[%s1785_s26 + $0x28] sm:$0xff] %v161_v4  ;;  %164 = vst [vmem:[%s1785_s26 + $0x30] sm:$0xff] %v163_v5  ;;  %v167_v7 = vld [vmem:[%s1780_s25 + $0x44] sm:$0xff]  ;;  %v173_v10 = vld [vmem:[%s1780_s25 + $0xb4] sm:$0xff] }
  0x16   : > { %v169_v8 = vld [vmem:[%s1780_s25 + $0xa0] sm:$0xff]  ;;  %166 = vst [vmem:[%s1785_s26 + $0x3c] sm:$0xff] %v165_v6  ;;  %168 = vst [vmem:[%s1785_s26 + $0x44] sm:$0xff] %v167_v7  ;;  %v171_v9 = vld [vmem:[%s1780_s25 + $0xa8] sm:$0xff] }
  0x17   : > { %170 = vst [vmem:[%s1785_s26 + $0x50] sm:$0xff] %v169_v8  ;;  %v175_v11 = vld [vmem:[%s1780_s25 + $0xbc] sm:$0xff]  ;;  %172 = vst [vmem:[%s1785_s26 + $0x58] sm:$0xff] %v171_v9  ;;  %v177_v12 = vld [vmem:[%s1780_s25 + $0xc8] sm:$0xff] }
  0x18   : > { %174 = vst [vmem:[%s1785_s26 + $0x64] sm:$0xff] %v173_v10  ;;  %176 = vst [vmem:[%s1785_s26 + $0x6c] sm:$0xff] %v175_v11  ;;  %v179_v13 = vld [vmem:[%s1780_s25 + $0xd0] sm:$0xff]  ;;  %v181_v14 = vld [vmem:[%s1780_s25 + $0xdc] sm:$0xff] }
  0x19   : > { %178 = vst [vmem:[%s1785_s26 + $0x78] sm:$0xff] %v177_v12  ;;  %180 = vst [vmem:[%s1785_s26 + $0x80] sm:$0xff] %v179_v13  ;;  %v183_v15 = vld [vmem:[%s1780_s25 + $0xe4] sm:$0xff]  ;;  %v189_v18 = vld [vmem:[%s1780_s25 + $0x154] sm:$0xff] }
  0x1a   : > { %182 = vst [vmem:[%s1785_s26 + $0x8c] sm:$0xff] %v181_v14  ;;  %v185_v16 = vld [vmem:[%s1780_s25 + $0x140] sm:$0xff]  ;;  %v187_v17 = vld [vmem:[%s1780_s25 + $0x148] sm:$0xff]  ;;  %184 = vst [vmem:[%s1785_s26 + $0x94] sm:$0xff] %v183_v15 }
  0x1b   : > { %186 = vst [vmem:[%s1785_s26 + $0xa0] sm:$0xff] %v185_v16  ;;  %188 = vst [vmem:[%s1785_s26 + $0xa8] sm:$0xff] %v187_v17  ;;  %v191_v19 = vld [vmem:[%s1780_s25 + $0x15c] sm:$0xff]  ;;  %v193_v20 = vld [vmem:[%s1780_s25 + $0x168] sm:$0xff] }
  0x1c   : > { %190 = vst [vmem:[%s1785_s26 + $0xb4] sm:$0xff] %v189_v18  ;;  %192 = vst [vmem:[%s1785_s26 + $0xbc] sm:$0xff] %v191_v19  ;;  %v195_v21 = vld [vmem:[%s1780_s25 + $0x170] sm:$0xff]  ;;  %v197_v22 = vld [vmem:[%s1780_s25 + $0x17c] sm:$0xff] }
  0x1d   : > { %194 = vst [vmem:[%s1785_s26 + $0xc8] sm:$0xff] %v193_v20  ;;  %v199_v23 = vld [vmem:[%s1780_s25 + $0x184] sm:$0xff]  ;;  %196 = vst [vmem:[%s1785_s26 + $0xd0] sm:$0xff] %v195_v21  ;;  %v205_v26 = vld [vmem:[%s1780_s25 + $0x1f4] sm:$0xff] }
  0x1e   : > { %198 = vst [vmem:[%s1785_s26 + $0xdc] sm:$0xff] %v197_v22  ;;  %200 = vst [vmem:[%s1785_s26 + $0xe4] sm:$0xff] %v199_v23  ;;  %v201_v24 = vld [vmem:[%s1780_s25 + $0x1e0] sm:$0xff]  ;;  %v203_v25 = vld [vmem:[%s1780_s25 + $0x1e8] sm:$0xff] }
  0x1f   : > { %202 = vst [vmem:[%s1785_s26 + $0xf0] sm:$0xff] %v201_v24  ;;  %204 = vst [vmem:[%s1785_s26 + $0xf8] sm:$0xff] %v203_v25  ;;  %v207_v27 = vld [vmem:[%s1780_s25 + $0x1fc] sm:$0xff]  ;;  %v209_v28 = vld [vmem:[%s1780_s25 + $0x208] sm:$0xff] }
  0x20   : > { %206 = vst [vmem:[%s1785_s26 + $0x104] sm:$0xff] %v205_v26  ;;  %v211_v29 = vld [vmem:[%s1780_s25 + $0x210] sm:$0xff]  ;;  %208 = vst [vmem:[%s1785_s26 + $0x10c] sm:$0xff] %v207_v27  ;;  %v213_v30 = vld [vmem:[%s1780_s25 + $0x21c] sm:$0xff] }
  0x21   : > { %210 = vst [vmem:[%s1785_s26 + $0x118] sm:$0xff] %v209_v28  ;;  %212 = vst [vmem:[%s1785_s26 + $0x120] sm:$0xff] %v211_v29  ;;  %v215_v31 = vld [vmem:[%s1780_s25 + $0x224] sm:$0xff]  ;;  %v1270_v32 = vld [vmem:[%s1780_s25 + $0x10] sm:$0xf] }
  0x22   : > { %214 = vst [vmem:[%s1785_s26 + $0x12c] sm:$0xff] %v213_v30  ;;  %216 = vst [vmem:[%s1785_s26 + $0x134] sm:$0xff] %v215_v31  ;;  %v1272_v33 = vld [vmem:[%s1780_s25 + $0x24] sm:$0xf]  ;;  %v1274_v34 = vld [vmem:[%s1780_s25 + $0x38] sm:$0xf] }
  0x23   : > { %1271 = vst [vmem:[%s1785_s26 + $0x10] sm:$0xf] %v1270_v32  ;;  %v1276_v35 = vld [vmem:[%s1780_s25 + $0x4c] sm:$0xf]  ;;  %1273 = vst [vmem:[%s1785_s26 + $0x24] sm:$0xf] %v1272_v33 }
  0x24   : > { %1275 = vst [vmem:[%s1785_s26 + $0x38] sm:$0xf] %v1274_v34  ;;  %1277 = vst [vmem:[%s1785_s26 + $0x4c] sm:$0xf] %v1276_v35  ;;  %v1278_v36 = vld [vmem:[%s1780_s25 + $0xb0] sm:$0xf] }
  0x25   : > { %v1280_v37 = vld [vmem:[%s1780_s25 + $0xc4] sm:$0xf]  ;;  %v1282_v38 = vld [vmem:[%s1780_s25 + $0xd8] sm:$0xf]  ;;  %1279 = vst [vmem:[%s1785_s26 + $0x60] sm:$0xf] %v1278_v36 }
  0x26   : > { %1281 = vst [vmem:[%s1785_s26 + $0x74] sm:$0xf] %v1280_v37  ;;  %1283 = vst [vmem:[%s1785_s26 + $0x88] sm:$0xf] %v1282_v38  ;;  %v1284_v39 = vld [vmem:[%s1780_s25 + $0xec] sm:$0xf] }
  0x27   : > { %v1286_v40 = vld [vmem:[%s1780_s25 + $0x150] sm:$0xf]  ;;  %v1288_v41 = vld [vmem:[%s1780_s25 + $0x164] sm:$0xf]  ;;  %1285 = vst [vmem:[%s1785_s26 + $0x9c] sm:$0xf] %v1284_v39 }
  0x28   : > { %1287 = vst [vmem:[%s1785_s26 + $0xb0] sm:$0xf] %v1286_v40  ;;  %1289 = vst [vmem:[%s1785_s26 + $0xc4] sm:$0xf] %v1288_v41  ;;  %v1290_v42 = vld [vmem:[%s1780_s25 + $0x178] sm:$0xf] }
  0x29   : > { %v1292_v43 = vld [vmem:[%s1780_s25 + $0x18c] sm:$0xf]  ;;  %v1294_v44 = vld [vmem:[%s1780_s25 + $0x1f0] sm:$0xf]  ;;  %1291 = vst [vmem:[%s1785_s26 + $0xd8] sm:$0xf] %v1290_v42 }
  0x2a   : > { %1293 = vst [vmem:[%s1785_s26 + $0xec] sm:$0xf] %v1292_v43  ;;  %1295 = vst [vmem:[%s1785_s26 + $0x100] sm:$0xf] %v1294_v44  ;;  %v1296_v45 = vld [vmem:[%s1780_s25 + $0x204] sm:$0xf] }
  0x2b   : > { %v1298_v46 = vld [vmem:[%s1780_s25 + $0x218] sm:$0xf]  ;;  %v1300_v47 = vld [vmem:[%s1780_s25 + $0x22c] sm:$0xf]  ;;  %1297 = vst [vmem:[%s1785_s26 + $0x114] sm:$0xf] %v1296_v45 }
  0x2c   : > { %1299 = vst [vmem:[%s1785_s26 + $0x128] sm:$0xf] %v1298_v46  ;;  %1301 = vst [vmem:[%s1785_s26 + $0x13c] sm:$0xf] %v1300_v47 }
  0x2d PF: > { %p1302_p5 = scmp.ge.s32.totalorder %s1724_s14, 1  ;;  %p260_p6 = scmp.lt.s32.totalorder %s1724_s14, 3 }
  0x2f   : > { %p261_p7 = pnand %p1302_p5, %p260_p6 }
  0x30   : > { %v1610_v48 = vld [vmem:[%s2084_s1 + $0x40] sm:$0xff] (!%p261_p7)   ;;  %v1614_v52 = vld [vmem:[%s2084_s1 + $0x48] sm:$0xff] (!%p261_p7)   ;;  %v1618_v56 = vld [vmem:[%s2084_s1 + $0x50] sm:$0xff] (!%p261_p7)   ;;  %s267_s4 = sand.u32 (!%p261_p7), 1, %s1716_s12   ;;  %vm834_vm0 = vcmask (!%p261_p7), 523264  }
  0x31   : > { %264 = sbr.rel (%p261_p7) target bundleno = 384 (0x180), region = 54  ;;  %v1611_v49 = vld [vmem:[%s2084_s1 + $0xc0] sm:$0xff] (!%p261_p7)   ;;  %1411 = vmatprep.subr.bf16.mxu0 (!%p261_p7), %v1610_v48  ;;  %v1615_v53 = vld [vmem:[%s2084_s1 + $0xc8] sm:$0xff] (!%p261_p7)   ;;  %v1619_v57 = vld [vmem:[%s2084_s1 + $0xd0] sm:$0xff] (!%p261_p7)  }
  0x32   : > { %v1612_v50 = vld [vmem:[%s2084_s1] sm:$0xff] (!%p261_p7)   ;;  %1475 = vmatprep.subr.bf16.mxu1 (!%p261_p7), %v1611_v49  ;;  %v1616_v54 = vld [vmem:[%s2084_s1 + $0x8] sm:$0xff] (!%p261_p7)   ;;  %v1620_v58 = vld [vmem:[%s2084_s1 + $0x10] sm:$0xff] (!%p261_p7)   ;;  %s1585_s11 = smul.u32 (!%p261_p7), 320, %s267_s4 }
  0x33   : > { %v1613_v51 = vld [vmem:[%s2084_s1 + $0x80] sm:$0xff] (!%p261_p7)   ;;  %1412 = vmatpush3.bf16.msra.mxu0 (!%p261_p7), %v1612_v50  ;;  %v1617_v55 = vld [vmem:[%s2084_s1 + $0x88] sm:$0xff] (!%p261_p7)   ;;  %v1621_v59 = vld [vmem:[%s2084_s1 + $0x90] sm:$0xff] (!%p261_p7)  }
  0x34   : > { %1476 = vmatpush3.bf16.msra.mxu1 (!%p261_p7), %v1613_v51  ;;  %1413 = vmatprep.subr.bf16.mxu0 (!%p261_p7), %v1614_v52  ;;  %v1622_v60 = vld [vmem:[%s2084_s1 + $0x58] sm:$0xff] (!%p261_p7)   ;;  %v1626_v0 = vld [vmem:[%s2084_s1 + $0x60] sm:$0xff] (!%p261_p7)   ;;  %v1630_v4 = vld [vmem:[%s2084_s1 + $0x68] sm:$0xff] (!%p261_p7)   ;;  %s1979_s29 = scalar_lea.vmem (!%p261_p7), [#allocation2], %s1585_s11  ;;  %s1303_s11 = sshll.u32 (!%p261_p7), %s1263_s15, 2 }
  0x35   : > { %1477 = vmatprep.subr.bf16.mxu1 (!%p261_p7), %v1615_v53  ;;  %v1623_v61 = vld [vmem:[%s2084_s1 + $0xd8] sm:$0xff] (!%p261_p7)   ;;  %v1627_v1 = vld [vmem:[%s2084_s1 + $0xe0] sm:$0xff] (!%p261_p7)   ;;  %v1631_v5 = vld [vmem:[%s2084_s1 + $0xe8] sm:$0xff] (!%p261_p7)   ;;  %p292_p8 = scmp.lt.s32.totalorder (!%p261_p7), %s1303_s11, 7 }
  0x36   : > { %v1624_v62 = vld [vmem:[%s2084_s1 + $0x18] sm:$0xff] (!%p261_p7)   ;;  %v1628_v2 = vld [vmem:[%s2084_s1 + $0x20] sm:$0xff] (!%p261_p7)   ;;  %v1632_v6 = vld [vmem:[%s2084_s1 + $0x28] sm:$0xff] (!%p261_p7)  }
  0x37   : > { %1414 = vmatpush3.bf16.msra.mxu0 (!%p261_p7), %v1616_v54  ;;  %v1625_v63 = vld [vmem:[%s2084_s1 + $0x98] sm:$0xff] (!%p261_p7)   ;;  %v1629_v3 = vld [vmem:[%s2084_s1 + $0xa0] sm:$0xff] (!%p261_p7)   ;;  %v1633_v7 = vld [vmem:[%s2084_s1 + $0xa8] sm:$0xff] (!%p261_p7)  }
  0x38   : > { %1478 = vmatpush3.bf16.msra.mxu1 %v1617_v55  ;;  %1415 = vmatprep.subr.bf16.mxu0 %v1618_v56  ;;  %v1634_v8 = vld [vmem:[%s2084_s1 + $0x70] sm:$0xff]   ;;  %v1638_v12 = vld [vmem:[%s2084_s1 + $0x78] sm:$0xff]   ;;  %v1647_v19 = vld [vmem:[%s1979_s29 + $0xc] ss:$20 sps:$4 sm:$0xff]   ;;  %s2091_s11 = smov (!%p292_p8, %s1303_s11), 7 }
  0x39   : > { %1479 = vmatprep.subr.bf16.mxu1 %v1619_v57  ;;  %v1635_v9 = vld [vmem:[%s2084_s1 + $0xf0] sm:$0xff]   ;;  %v1639_v13 = vld [vmem:[%s2084_s1 + $0xf8] sm:$0xff]   ;;  %v1648_v20 = vld [vmem:[%s2084_s1 + $0x100] sm:$0xff]   ;;  %988 = vmatprep.mubr.bf16.mxu1 %v1647_v19  ;;  %s1304_s17 = sshll.u32 %s2091_s11, 2 }
  0x3a   : > { %v1636_v10 = vld [vmem:[%s2084_s1 + $0x30] sm:$0xff]   ;;  %v1640_v14 = vld [vmem:[%s2084_s1 + $0x38] sm:$0xff]   ;;  %v1649_v21 = vld [vmem:[%s1979_s29 + $0x2c] ss:$20 sps:$4 sm:$0xff]   ;;  %s295_s20 = scalar_lea.vmem %s2086_s3, %s1304_s17 }
  0x3b   : > { %1416 = vmatpush3.bf16.msra.mxu0 %v1620_v58  ;;  %v1637_v11 = vld [vmem:[%s2084_s1 + $0xb0] sm:$0xff]   ;;  %v1641_v15 = vld [vmem:[%s2084_s1 + $0xb8] sm:$0xff]   ;;  %v1661_v26 = vld [vmem:[%s2084_s1 + $0x108] sm:$0xff]  }
  0x3c   : > { %1480 = vmatpush3.bf16.msra.mxu1 %v1621_v59  ;;  %1417 = vmatprep.subr.bf16.mxu0 %v1622_v60  ;;  %v1642_v16 = vld [vmem:[%s1979_s29] ss:$20 sps:$4 sm:$0xff]   ;;  %v1644_v17 = vld [vmem:[%s1979_s29 + $0x4] ss:$20 sps:$4 sm:$0xff]   ;;  %v1645_v18 = vld [vmem:[%s1979_s29 + $0x8] ss:$20 sps:$4 sm:$0xff]  }
  0x3d   : > { %1481 = vmatprep.subr.bf16.mxu1 %v1623_v61  ;;  %891 = vmatprep.mubr.bf16.mxu0 %v1644_v17  ;;  %v1651_v22 = vld [vmem:[%s1979_s29 + $0x34] ss:$20 sps:$4 sm:$0xff]   ;;  %v1654_v24 = vld [vmem:[%s1979_s29 + $0x30] ss:$20 sps:$4 sm:$0xff]   ;;  %v1660_v29 = vld [vmem:[%s1979_s29 + $0x58] ss:$20 sps:$4 sm:$0xff]  }
  0x3e   : > { %v1653_v23 = vld [vmem:[%s1979_s29 + $0x28] ss:$20 sps:$4 sm:$0xff]   ;;  %v1659_v28 = vld [vmem:[%s1979_s29 + $0x50] ss:$20 sps:$4 sm:$0xff]   ;;  %v1666_v34 = vld [vmem:[%s1979_s29 + $0x78] ss:$20 sps:$4 sm:$0xff]  }
  0x3f   : > { %1418 = vmatpush3.bf16.msra.mxu0 %v1624_v62  ;;  %v1655_v25 = vld [vmem:[%s1979_s29 + $0x54] ss:$20 sps:$4 sm:$0xff]   ;;  %v1657_v27 = vld [vmem:[%s1979_s29 + $0x5c] ss:$20 sps:$4 sm:$0xff]   ;;  %v1664_v32 = vld [vmem:[%s1979_s29 + $0x84] ss:$20 sps:$4 sm:$0xff]  }
  0x40   : > { %1482 = vmatpush3.bf16.msra.mxu1 %v1625_v63  ;;  %1419 = vmatprep.subr.bf16.mxu0 %v1626_v0  ;;  %v1674_v30 = vld [vmem:[%s2084_s1 + $0x110] sm:$0xff]   ;;  %v1687_v33 = vld [vmem:[%s2084_s1 + $0x118] sm:$0xff]   ;;  %v1670_v37 = vld [vmem:[%s1979_s29 + $0xac] ss:$20 sps:$4 sm:$0xff]  }
  0x41   : > { %1483 = vmatprep.subr.bf16.mxu1 %v1627_v1  ;;  %v1662_v31 = vld [vmem:[%s1979_s29 + $0x7c] ss:$20 sps:$4 sm:$0xff]   ;;  %v1667_v35 = vld [vmem:[%s1979_s29 + $0x80] ss:$20 sps:$4 sm:$0xff]   ;;  %v1668_v36 = vld [vmem:[%s1979_s29 + $0xa4] ss:$20 sps:$4 sm:$0xff]  }
  0x42   : > { %v1672_v38 = vld [vmem:[%s1979_s29 + $0xa0] ss:$20 sps:$4 sm:$0xff]   ;;  %v1673_v39 = vld [vmem:[%s1979_s29 + $0xa8] ss:$20 sps:$4 sm:$0xff]   ;;  %v1680_v43 = vld [vmem:[%s1979_s29 + $0xd0] ss:$20 sps:$4 sm:$0xff]  }
  0x43   : > { %1420 = vmatpush3.bf16.msra.mxu0 %v1628_v2  ;;  %v1675_v40 = vld [vmem:[%s1979_s29 + $0xcc] ss:$20 sps:$4 sm:$0xff]   ;;  %v1677_v41 = vld [vmem:[%s1979_s29 + $0xd4] ss:$20 sps:$4 sm:$0xff]   ;;  %v1683_v45 = vld [vmem:[%s1979_s29 + $0xfc] ss:$20 sps:$4 sm:$0xff]  }
  0x44   : > { %1484 = vmatpush3.bf16.msra.mxu1 %v1629_v3  ;;  %1421 = vmatprep.subr.bf16.mxu0 %v1630_v4  ;;  %v1679_v42 = vld [vmem:[%s1979_s29 + $0xc8] ss:$20 sps:$4 sm:$0xff]   ;;  %v1685_v46 = vld [vmem:[%s1979_s29 + $0xf0] ss:$20 sps:$4 sm:$0xff]   ;;  %v1686_v47 = vld [vmem:[%s1979_s29 + $0xf8] ss:$20 sps:$4 sm:$0xff]  }
  0x45   : > { %1485 = vmatprep.subr.bf16.mxu1 %v1631_v5  ;;  %v1681_v44 = vld [vmem:[%s1979_s29 + $0xf4] ss:$20 sps:$4 sm:$0xff]   ;;  %v1688_v48 = vld [vmem:[%s1979_s29 + $0x11c] ss:$20 sps:$4 sm:$0xff]   ;;  %v1690_v49 = vld [vmem:[%s1979_s29 + $0x124] ss:$20 sps:$4 sm:$0xff]  }
  0x46   : > { %v1692_v50 = vld [vmem:[%s1979_s29 + $0x118] ss:$20 sps:$4 sm:$0xff]   ;;  %v1693_v51 = vld [vmem:[%s1979_s29 + $0x120] ss:$20 sps:$4 sm:$0xff]   ;;  %v1694_v52 = vld [vmem:[%s1979_s29 + $0x10] ss:$20 sps:$4 sm:$0xff]  }
  0x47   : > { %1422 = vmatpush3.bf16.msra.mxu0 %v1632_v6  ;;  %v1695_v53 = vld [vmem:[%s1979_s29 + $0xb0] ss:$20 sps:$4 sm:$0xff]   ;;  %v1696_v54 = vld [vmem:[%s1979_s29 + $0x38] ss:$20 sps:$4 sm:$0xff]   ;;  %v1698_v56 = vld [vmem:[%s1979_s29 + $0x60] ss:$20 sps:$4 sm:$0xff]  }
  0x48   : > { %1486 = vmatpush3.bf16.msra.mxu1 %v1633_v7  ;;  %1423 = vmatprep.subr.bf16.mxu0 %v1634_v8  ;;  %v1697_v55 = vld [vmem:[%s1979_s29 + $0xd8] ss:$20 sps:$4 sm:$0xff]   ;;  %v1699_v57 = vld [vmem:[%s1979_s29 + $0x100] ss:$20 sps:$4 sm:$0xff]   ;;  %v1700_v58 = vld [vmem:[%s1979_s29 + $0x88] ss:$20 sps:$4 sm:$0xff]  }
  0x49   : > { %1487 = vmatprep.subr.bf16.mxu1 %v1635_v9  ;;  %v1701_v59 = vld [vmem:[%s1979_s29 + $0x128] ss:$20 sps:$4 sm:$0xff]  }
  0x4b   : > { %1424 = vmatpush3.bf16.msra.mxu0 %v1636_v10 }
  0x4c   : > { %1488 = vmatpush3.bf16.msra.mxu1 %v1637_v11  ;;  %1425 = vmatprep.subr.bf16.mxu0 %v1638_v12 }
  0x4d   : > { %1489 = vmatprep.subr.bf16.mxu1 %v1639_v13 }
  0x4f   : > { %1426 = vmatpush3.bf16.msra.mxu0 %v1640_v14 }
  0x50   : > { %1490 = vmatpush3.bf16.msra.mxu1 %v1641_v15  ;;  %1551 = vmatprep.subr.bf16.mxu0 %v1648_v20 }
  0x51   : > { %1575 = vmatprep.subr.bf16.mxu1 %v1648_v20 }
  0x52   : > { %892 = vmatmul.mubr.bf16.vlgmr.msra.gmra.mrb[0].mxu0 %v1642_v16 }
  0x53   : > { %989 = vmatmul.mubr.bf16.vlgmr.msra.gmra.mrb[0].mxu1 %v1645_v18  ;;  %1552 = vmatpush3.bf16.msra.mxu0 %v1648_v20 }
  0x54   : > { %1579 = vmatpush3.bf16.msra.mxu1 %v1648_v20  ;;  %899 = vmatprep.mubr.bf16.mxu0 %v1649_v21 }
  0x55   : > { %996 = vmatprep.mubr.bf16.mxu1 %v1651_v22  ;;  %1553 = vmatprep.subr.bf16.mxu0 %v1661_v26 }
  0x56   : > { %1576 = vmatprep.subr.bf16.mxu1 %v1661_v26 }
  0x57   : > { %1554 = vmatpush3.bf16.msra.mxu0 %v1661_v26 }
  0x58   : > { %1580 = vmatpush3.bf16.msra.mxu1 %v1661_v26  ;;  %1555 = vmatprep.subr.bf16.mxu0 %v1674_v30 }
  0x59   : > { %1577 = vmatprep.subr.bf16.mxu1 %v1674_v30 }
  0x5a   : > { %900 = vmatmul.mubr.bf16.gmra.mrb[4].mxu0 %v1653_v23 }
  0x5b   : > { %997 = vmatmul.mubr.bf16.gmra.mrb[4].mxu1 %v1654_v24  ;;  %907 = vmatprep.mubr.bf16.mxu0 %v1655_v25 }
  0x5c   : > { %1004 = vmatprep.mubr.bf16.mxu1 %v1657_v27  ;;  %1556 = vmatpush3.bf16.msra.mxu0 %v1674_v30 }
  0x5d   : > { %1581 = vmatpush3.bf16.msra.mxu1 %v1674_v30  ;;  %1557 = vmatprep.subr.bf16.mxu0 %v1687_v33 }
  0x5e   : > { %1578 = vmatprep.subr.bf16.mxu1 %v1687_v33 }
  0x60   : > { %1558 = vmatpush3.bf16.msra.mxu0 %v1687_v33 }
  0x61   : > { %1582 = vmatpush3.bf16.msra.mxu1 %v1687_v33 }
  0x62   : > { %908 = vmatmul.mubr.bf16.gmra.mrb[8].mxu0 %v1659_v28 }
  0x63   : > { %1005 = vmatmul.mubr.bf16.gmra.mrb[8].mxu1 %v1660_v29  ;;  %915 = vmatprep.mubr.bf16.mxu0 %v1662_v31 }
  0x64   : > { %1012 = vmatprep.mubr.bf16.mxu1 %v1664_v32 }
  0x6a   : > { %916 = vmatmul.mubr.bf16.gmra.mrb[12].mxu0 %v1666_v34 }
  0x6b   : > { %1013 = vmatmul.mubr.bf16.gmra.mrb[12].mxu1 %v1667_v35  ;;  %923 = vmatprep.mubr.bf16.mxu0 %v1668_v36 }
  0x6c   : > { %1020 = vmatprep.mubr.bf16.mxu1 %v1670_v37 }
  0x72   : > { %924 = vmatmul.mubr.bf16.gmra.mrb[16].mxu0 %v1672_v38 }
  0x73   : > { %1021 = vmatmul.mubr.bf16.gmra.mrb[16].mxu1 %v1673_v39  ;;  %931 = vmatprep.mubr.bf16.mxu0 %v1675_v40 }
  0x74   : > { %1028 = vmatprep.mubr.bf16.mxu1 %v1677_v41 }
  0x7a   : > { %932 = vmatmul.mubr.bf16.gmra.mrb[20].mxu0 %v1679_v42 }
  0x7b   : > { %1029 = vmatmul.mubr.bf16.gmra.mrb[20].mxu1 %v1680_v43  ;;  %939 = vmatprep.mubr.bf16.mxu0 %v1681_v44 }
  0x7c   : > { %1036 = vmatprep.mubr.bf16.mxu1 %v1683_v45 }
  0x82   : > { %940 = vmatmul.mubr.bf16.gmra.mrb[24].mxu0 %v1685_v46 }
  0x83   : > { %1037 = vmatmul.mubr.bf16.gmra.mrb[24].mxu1 %v1686_v47  ;;  %947 = vmatprep.mubr.bf16.mxu0 %v1688_v48 }
  0x84   : > { %1044 = vmatprep.mubr.bf16.mxu1 %v1690_v49 }
  0x8a   : > { %948 = vmatmul.mubr.bf16.gmra.mrb[28].mxu0 %v1692_v50 }
  0x8b   : > { %1045 = vmatmul.mubr.bf16.gmra.mrb[28].mxu1 %v1693_v51  ;;  %1559 = vmatprep.mubr.msk.bf16.mxu0 %vm834_vm0, %v1694_v52 }
  0x8c   : > { %1567 = vmatprep.mubr.msk.bf16.mxu1 %vm834_vm0, %v1695_v53 }
  0x92   : > { %1560 = vmatmul.mubr.msk.bf16.vlgmr.msra.gmra.mrb[32].mxu0 %vm834_vm0, %v1696_v54 }
  0x93   : > { %1568 = vmatmul.mubr.msk.bf16.vlgmr.msra.gmra.mrb[32].mxu1 %vm834_vm0, %v1697_v55  ;;  %1563 = vmatprep.mubr.msk.bf16.mxu0 %vm834_vm0, %v1698_v56 }
  0x94   : > { %1571 = vmatprep.mubr.msk.bf16.mxu1 %vm834_vm0, %v1699_v57 }
  0x9a   : > { %1564 = vmatmul.mubr.msk.bf16.gmra.mrb[36].mxu0 %vm834_vm0, %v1700_v58 }
  0x9b   : > { %1572 = vmatmul.mubr.msk.bf16.gmra.mrb[36].mxu1 %vm834_vm0, %v1701_v59 }
 0x125   : > { %v1427_v60 = vpop.f32.mrb[0].mxu0 }
 0x126   : > { %v1491_v61 = vpop.f32.mrb[0].mxu1  ;;  %v1428_v62 = vpop.f32.mrb[1].mxu0 }
 0x127   : > { %v1429_v63 = vadd.f32 %v1428_v62, %v1427_v60  ;;  %v1492_v0 = vpop.f32.mrb[1].mxu1  ;;  %v1430_v1 = vpop.f32.mrb[2].mxu0 }
 0x128   : > { %v1493_v2 = vadd.f32 %v1492_v0, %v1491_v61  ;;  %v1494_v3 = vpop.f32.mrb[2].mxu1  ;;  %v1431_v4 = vpop.f32.mrb[3].mxu0 }
 0x129   : > { %v1432_v5 = vadd.f32 %v1431_v4, %v1430_v1  ;;  %v1495_v6 = vpop.f32.mrb[3].mxu1 }
 0x12a   : > { %v1496_v7 = vadd.f32 %v1495_v6, %v1494_v3  ;;  %v2041_v8 = vadd.f32 %v1493_v2, %v1429_v63 }
 0x12c   : > { %v2043_v9 = vadd.f32 %v1496_v7, %v1432_v5 }
 0x12d   : > { %v1433_v10 = vpop.f32.mrb[4].mxu0 }
 0x12e   : > { %v1497_v11 = vpop.f32.mrb[4].mxu1  ;;  %v1434_v12 = vpop.f32.mrb[5].mxu0 }
 0x12f   : > { %v1435_v13 = vadd.f32 %v1434_v12, %v1433_v10  ;;  %v1498_v14 = vpop.f32.mrb[5].mxu1  ;;  %v1436_v15 = vpop.f32.mrb[6].mxu0 }
 0x130   : > { %v1499_v16 = vadd.f32 %v1498_v14, %v1497_v11  ;;  %v1500_v17 = vpop.f32.mrb[6].mxu1  ;;  %v1437_v18 = vpop.f32.mrb[7].mxu0 }
 0x131   : > { %v1438_v19 = vadd.f32 %v1437_v18, %v1436_v15  ;;  %v1501_v20 = vpop.f32.mrb[7].mxu1 }
 0x132   : > { %v1502_v21 = vadd.f32 %v1501_v20, %v1500_v17  ;;  %v2045_v22 = vadd.f32 %v1499_v16, %v1435_v13 }
 0x134   : > { %v2047_v23 = vadd.f32 %v1502_v21, %v1438_v19 }
 0x135   : > { %v1439_v24 = vpop.f32.mrb[8].mxu0 }
 0x136   : > { %v1503_v25 = vpop.f32.mrb[8].mxu1  ;;  %v1440_v26 = vpop.f32.mrb[9].mxu0 }
 0x137   : > { %v1441_v27 = vadd.f32 %v1440_v26, %v1439_v24  ;;  %v1504_v28 = vpop.f32.mrb[9].mxu1  ;;  %v1442_v29 = vpop.f32.mrb[10].mxu0 }
 0x138   : > { %v1505_v30 = vadd.f32 %v1504_v28, %v1503_v25  ;;  %v1506_v31 = vpop.f32.mrb[10].mxu1  ;;  %v1443_v32 = vpop.f32.mrb[11].mxu0 }
 0x139   : > { %v1444_v33 = vadd.f32 %v1443_v32, %v1442_v29  ;;  %v1507_v34 = vpop.f32.mrb[11].mxu1 }
 0x13a   : > { %v1508_v35 = vadd.f32 %v1507_v34, %v1506_v31  ;;  %v2049_v36 = vadd.f32 %v1505_v30, %v1441_v27 }
 0x13c   : > { %v2051_v37 = vadd.f32 %v1508_v35, %v1444_v33 }
 0x13d   : > { %v1445_v38 = vpop.f32.mrb[12].mxu0 }
 0x13e   : > { %v1509_v39 = vpop.f32.mrb[12].mxu1  ;;  %v1446_v40 = vpop.f32.mrb[13].mxu0 }
 0x13f   : > { %v1447_v41 = vadd.f32 %v1446_v40, %v1445_v38  ;;  %v1510_v42 = vpop.f32.mrb[13].mxu1  ;;  %v1448_v43 = vpop.f32.mrb[14].mxu0 }
 0x140   : > { %v1511_v44 = vadd.f32 %v1510_v42, %v1509_v39  ;;  %v1512_v45 = vpop.f32.mrb[14].mxu1  ;;  %v1449_v46 = vpop.f32.mrb[15].mxu0 }
 0x141   : > { %v1450_v47 = vadd.f32 %v1449_v46, %v1448_v43  ;;  %v1513_v48 = vpop.f32.mrb[15].mxu1 }
 0x142   : > { %v1514_v49 = vadd.f32 %v1513_v48, %v1512_v45  ;;  %v2053_v50 = vadd.f32 %v1511_v44, %v1447_v41 }
 0x144   : > { %v2055_v51 = vadd.f32 %v1514_v49, %v1450_v47 }
 0x145   : > { %v1451_v52 = vpop.f32.mrb[16].mxu0 }
 0x146   : > { %v1515_v53 = vpop.f32.mrb[16].mxu1  ;;  %v1452_v54 = vpop.f32.mrb[17].mxu0 }
 0x147   : > { %v1453_v55 = vadd.f32 %v1452_v54, %v1451_v52  ;;  %v1516_v56 = vpop.f32.mrb[17].mxu1  ;;  %v1454_v57 = vpop.f32.mrb[18].mxu0 }
 0x148   : > { %v1517_v58 = vadd.f32 %v1516_v56, %v1515_v53  ;;  %v1518_v59 = vpop.f32.mrb[18].mxu1  ;;  %v1455_v60 = vpop.f32.mrb[19].mxu0 }
 0x149   : > { %v1456_v61 = vadd.f32 %v1455_v60, %v1454_v57  ;;  %v1519_v62 = vpop.f32.mrb[19].mxu1 }
 0x14a   : > { %v1520_v63 = vadd.f32 %v1519_v62, %v1518_v59  ;;  %v1023_v0 = vadd.f32 %v1517_v58, %v1453_v55 }
 0x14c   : > { %v1026_v1 = vadd.f32 %v1520_v63, %v1456_v61 }
 0x14d   : > { %v1457_v2 = vpop.f32.mrb[20].mxu0 }
 0x14e   : > { %v1521_v3 = vpop.f32.mrb[20].mxu1  ;;  %v1458_v4 = vpop.f32.mrb[21].mxu0 }
 0x14f   : > { %v1459_v5 = vadd.f32 %v1458_v4, %v1457_v2  ;;  %v1522_v6 = vpop.f32.mrb[21].mxu1  ;;  %v1460_v7 = vpop.f32.mrb[22].mxu0 }
 0x150   : > { %v1523_v10 = vadd.f32 %v1522_v6, %v1521_v3  ;;  %v1524_v11 = vpop.f32.mrb[22].mxu1  ;;  %v1461_v12 = vpop.f32.mrb[23].mxu0 }
 0x151   : > { %v1462_v13 = vadd.f32 %v1461_v12, %v1460_v7  ;;  %v1525_v14 = vpop.f32.mrb[23].mxu1 }
 0x152   : > { %v1526_v15 = vadd.f32 %v1525_v14, %v1524_v11  ;;  %v1031_v16 = vadd.f32 %v1523_v10, %v1459_v5 }
 0x154   : > { %v1034_v17 = vadd.f32 %v1526_v15, %v1462_v13 }
 0x155   : > { %v1463_v18 = vpop.f32.mrb[24].mxu0 }
 0x156   : > { %v1527_v19 = vpop.f32.mrb[24].mxu1  ;;  %v1464_v20 = vpop.f32.mrb[25].mxu0 }
 0x157   : > { %v1465_v21 = vadd.f32 %v1464_v20, %v1463_v18  ;;  %v1528_v24 = vpop.f32.mrb[25].mxu1  ;;  %v1466_v25 = vpop.f32.mrb[26].mxu0 }
 0x158   : > { %v1529_v26 = vadd.f32 %v1528_v24, %v1527_v19  ;;  %v1530_v27 = vpop.f32.mrb[26].mxu1  ;;  %v1467_v28 = vpop.f32.mrb[27].mxu0 }
 0x159   : > { %v1468_v29 = vadd.f32 %v1467_v28, %v1466_v25  ;;  %v1531_v30 = vpop.f32.mrb[27].mxu1 }
 0x15a   : > { %v1532_v31 = vadd.f32 %v1531_v30, %v1530_v27  ;;  %v1039_v32 = vadd.f32 %v1529_v26, %v1465_v21 }
 0x15c   : > { %v1042_v33 = vadd.f32 %v1532_v31, %v1468_v29 }
 0x15d   : > { %v1469_v34 = vpop.f32.mrb[28].mxu0 }
 0x15e   : > { %v1533_v35 = vpop.f32.mrb[28].mxu1  ;;  %v1470_v38 = vpop.f32.mrb[29].mxu0 }
 0x15f   : > { %v1471_v39 = vadd.f32 %v1470_v38, %v1469_v34  ;;  %v1534_v40 = vpop.f32.mrb[29].mxu1  ;;  %v1472_v41 = vpop.f32.mrb[30].mxu0 }
 0x160   : > { %v1535_v42 = vadd.f32 %v1534_v40, %v1533_v35  ;;  %v1536_v43 = vpop.f32.mrb[30].mxu1  ;;  %v1473_v44 = vpop.f32.mrb[31].mxu0 }
 0x161   : > { %v1474_v45 = vadd.f32 %v1473_v44, %v1472_v41  ;;  %v1537_v46 = vpop.f32.mrb[31].mxu1 }
 0x162   : > { %v1538_v47 = vadd.f32 %v1537_v46, %v1536_v43  ;;  %v1047_v48 = vadd.f32 %v1535_v42, %v1471_v39 }
 0x164   : > { %v1050_v49 = vadd.f32 %v1538_v47, %v1474_v45 }
 0x165   : > { %v1561_v52 = vpop.f32.mrb[32].mxu0 }
 0x166   : > { %v1096_v53 = vadd.f32 %v1561_v52, %v2045_v22  ;;  %v1569_v54 = vpop.f32.mrb[32].mxu1  ;;  %v1087_v55 = vpop.f32.mrb[33].mxu0 }
 0x167   : > { %v1128_v56 = vadd.f32 %v1569_v54, %v1031_v16  ;;  %v1088_v57 = vadd.f32 %v1087_v55, %v2041_v8  ;;  %v1119_v58 = vpop.f32.mrb[33].mxu1  ;;  %v1562_v59 = vpop.f32.mrb[34].mxu0 }
 0x168   : > { %v1120_v60 = vadd.f32 %v1119_v58, %v1023_v0  ;;  %v1099_v61 = vadd.f32 %v1562_v59, %v2047_v23  ;;  %v1570_v62 = vpop.f32.mrb[34].mxu1  ;;  %v1090_v63 = vpop.f32.mrb[35].mxu0 }
 0x169   : > { %v1131_v2 = vadd.f32 %v1570_v62, %v1034_v17  ;;  %v1091_v3 = vadd.f32 %v1090_v63, %v2043_v9  ;;  %v1122_v4 = vpop.f32.mrb[35].mxu1 }
 0x16a   : > { %v1123_v5 = vadd.f32 %v1122_v4, %v1026_v1 }
 0x16d   : > { %v1565_v6 = vpop.f32.mrb[36].mxu0 }
 0x16e   : > { %v1112_v22 = vadd.f32 %v1565_v6, %v2053_v50  ;;  %v1573_v7 = vpop.f32.mrb[36].mxu1  ;;  %v1103_v10 = vpop.f32.mrb[37].mxu0 }
 0x16f   : > { %v1144_v8 = vadd.f32 %v1573_v7, %v1047_v48  ;;  %v1104_v11 = vadd.f32 %v1103_v10, %v2049_v36  ;;  %v1135_v0 = vpop.f32.mrb[37].mxu1  ;;  %v1566_v12 = vpop.f32.mrb[38].mxu0  ;;  %v1389_v36 = vld [vmem:[%s2085_s2] ss:$0 sm:$0xff] }
 0x170   : > { %v1156_v23 = vmax.f32 %v1096_v53, %v1112_v22  ;;  %v1136_v13 = vadd.f32 %v1135_v0, %v1039_v32  ;;  %v1115_v14 = vadd.f32 %v1566_v12, %v2055_v51  ;;  %v1574_v15 = vpop.f32.mrb[38].mxu1  ;;  %v1106_v9 = vpop.f32.mrb[39].mxu0 }
 0x171   : > { %v1150_v16 = vmax.f32 %v1088_v57, %v1104_v11  ;;  %v1147_v1 = vadd.f32 %v1574_v15, %v1050_v49  ;;  %v1107_v17 = vadd.f32 %v1106_v9, %v2051_v37  ;;  %v1138_v50 = vpop.f32.mrb[39].mxu1 }
 0x172   : > { %v1157_v18 = vmax.f32 %v1156_v23, %v1128_v56  ;;  %v1159_v19 = vmax.f32 %v1099_v61, %v1115_v14  ;;  %v1139_v20 = vadd.f32 %v1138_v50, %v1042_v33 }
 0x173   : > { %v1151_v21 = vmax.f32 %v1150_v16, %v1120_v60  ;;  %v1153_v24 = vmax.f32 %v1091_v3, %v1107_v17 }
 0x174   : > { %v1158_v25 = vmax.f32 %v1157_v18, %v1144_v8  ;;  %v1160_v26 = vmax.f32 %v1159_v19, %v1131_v2 }
 0x175   : > { %v1152_v51 = vmax.f32 %v1151_v21, %v1136_v13  ;;  %v1154_v27 = vmax.f32 %v1153_v24, %v1123_v5 }
 0x176   : > { %v1171_v28 = vadd.f32 %v1389_v36, %v1158_v25  ;;  %v1161_v29 = vmax.f32 %v1160_v26, %v1147_v1 }
 0x177   : > { %v1169_v30 = vadd.f32 %v1389_v36, %v1152_v51  ;;  %v1155_v37 = vmax.f32 %v1154_v27, %v1139_v20 }
 0x178   : > { %v1172_v31 = vadd.f32 %v1389_v36, %v1161_v29  ;;  %v1175_v34 = vmax.f32 %v1171_v28, 0.0 }
 0x179   : > { %v1170_v32 = vadd.f32 %v1389_v36, %v1155_v37  ;;  %v1173_v35 = vmax.f32 %v1169_v30, 0.0 }
 0x17a   : > { %v1176_v33 = vmax.f32 %v1172_v31, 0.0 }
 0x17b   : > { %v1174_v38 = vmax.f32 %v1170_v32, 0.0 }
 0x17c   : > { %v1408_v39 = vpack.c.bf16 %v1176_v33, %v1175_v34 }
 0x17d   : > { %v1403_v40 = vpack.c.bf16 %v1174_v38, %v1173_v35 }
 0x17e   : > { %1410 = vst [vmem:[%s295_s20 + $0x8] sm:$0xff] %v1408_v39  }
 0x17f   : > { %1404 = vst [vmem:[%s295_s20] sm:$0xff] %v1403_v40  }
 0x180 PF: > { %p10_p9 = scmp.ge.s32.totalorder %s1763_s16, 4   ;;  %s2087_s12 = smov %s1720_s13 }
 0x181   : > { %s2088_s13 = smov %s1772_s19  ;;  %s2089_s14 = smov %s1763_s16 }
 0x182   :  { %12 = sbr.rel (!%p10_p9) target bundleno = 2 (0x2), region = 99 }

// kernel: cnn_forward.5
= control target key start
LH: loop header
LB: loop body
LE: loop exit
PB: predicated region body
PF: predicated region fallthrough
CT: control target
= control target key end

     0   :  { %s2978_s1 = inlined_call_operand.vmem [shape: bf16[1152,256], index: 1, kind: input, shape index: {}]   ;;  %s2979_s0 = inlined_call_operand.vmem [shape: bf16[4,8,1152], index: 0, kind: input, shape index: {}]   ;;  %s2980_s3 = inlined_call_operand.vmem [shape: bf16[256,256], index: 3, kind: input, shape index: {}]   ;;  %s2981_s5 = inlined_call_operand.vmem [shape: bf16[256,128], index: 5, kind: input, shape index: {}]   ;;  %s2982_s2 = inlined_call_operand.vmem [shape: f32[1,256], index: 2, kind: input, shape index: {}]   ;;  %s2983_s4 = inlined_call_operand.vmem [shape: f32[1,256], index: 4, kind: input, shape index: {}]   ;;  %s2984_s6 = inlined_call_operand.vmem [shape: f32[1,128], index: 6, kind: input, shape index: {}]   ;;  %s2985_s7 = inlined_call_operand.vmem [shape: f32[8,128], index: 7, kind: output, shape index: {}]  }
   0x1   :  { %v1985_v0 = vld [vmem:[%s2978_s1 + $0x104] ss:$8 sps:$4 sm:$0xff]   ;;  %v1987_v1 = vld [vmem:[%s2978_s1 + $0x100] ss:$8 sps:$4 sm:$0xff]   ;;  %v1988_v2 = vld [vmem:[%s2978_s1 + $0x114] ss:$8 sps:$4 sm:$0xff]  }
   0x2   :  { %1056 = vmatprep.subr.bf16.mxu0 %v1985_v0  ;;  %v1990_v3 = vld [vmem:[%s2978_s1 + $0x110] ss:$8 sps:$4 sm:$0xff]   ;;  %v1991_v4 = vld [vmem:[%s2978_s1 + $0x124] ss:$8 sps:$4 sm:$0xff]   ;;  %v1993_v5 = vld [vmem:[%s2978_s1 + $0x120] ss:$8 sps:$4 sm:$0xff]  }
   0x3   :  { %1057 = vmatpush1.bf16.msra.mxu0 %v1987_v1  ;;  %v1994_v6 = vld [vmem:[%s2978_s1 + $0x134] ss:$8 sps:$4 sm:$0xff]   ;;  %v1996_v7 = vld [vmem:[%s2978_s1 + $0x130] ss:$8 sps:$4 sm:$0xff]   ;;  %v1997_v8 = vld [vmem:[%s2978_s1 + $0x144] ss:$8 sps:$4 sm:$0xff]  }
   0x4   :  { %1058 = vmatprep.subr.bf16.mxu0 %v1988_v2  ;;  %v1999_v9 = vld [vmem:[%s2978_s1 + $0x140] ss:$8 sps:$4 sm:$0xff]   ;;  %v2000_v10 = vld [vmem:[%s2978_s1 + $0x154] ss:$8 sps:$4 sm:$0xff]   ;;  %v2002_v11 = vld [vmem:[%s2978_s1 + $0x150] ss:$8 sps:$4 sm:$0xff]  }
   0x5   :  { %v2003_v12 = vld [vmem:[%s2978_s1 + $0x164] ss:$8 sps:$4 sm:$0xff]   ;;  %v2005_v14 = vld [vmem:[%s2978_s1 + $0x160] ss:$8 sps:$4 sm:$0xff]   ;;  %v2006_v15 = vld [vmem:[%s2978_s1 + $0x174] ss:$8 sps:$4 sm:$0xff]  }
   0x6   :  { %v2035_v13 = vld [vmem:[%s2979_s0 + $0xc] ss:$36 sps:$4 sm:$0xff]   ;;  %v2011_v18 = vld [vmem:[%s2978_s1 + $0x180] ss:$8 sps:$4 sm:$0xff]   ;;  %v2012_v19 = vld [vmem:[%s2978_s1 + $0x194] ss:$8 sps:$4 sm:$0xff]  }
   0x7   :  { %1059 = vmatpush1.bf16.msra.mxu0 %v1990_v3  ;;  %1088 = vmatprep.mubr.bf16.mxu0 %v2035_v13  ;;  %v2008_v16 = vld [vmem:[%s2978_s1 + $0x170] ss:$8 sps:$4 sm:$0xff]   ;;  %v2009_v17 = vld [vmem:[%s2978_s1 + $0x184] ss:$8 sps:$4 sm:$0xff]   ;;  %v2062_v21 = vld [vmem:[%s2978_s1] ss:$8 sps:$4 sm:$0xff]  }
   0x8   :  { %1060 = vmatprep.subr.bf16.mxu0 %v1991_v4  ;;  %v2060_v20 = vld [vmem:[%s2978_s1 + $0x4] ss:$8 sps:$4 sm:$0xff]   ;;  %v2014_v22 = vld [vmem:[%s2978_s1 + $0x190] ss:$8 sps:$4 sm:$0xff]   ;;  %v2066_v24 = vld [vmem:[%s2978_s1 + $0x14] ss:$8 sps:$4 sm:$0xff]  }
   0x9   :  { %v2015_v23 = vld [vmem:[%s2978_s1 + $0x1a4] ss:$8 sps:$4 sm:$0xff]   ;;  %1003 = vmatprep.subr.bf16.mxu1 %v2060_v20  ;;  %v2068_v25 = vld [vmem:[%s2978_s1 + $0x10] ss:$8 sps:$4 sm:$0xff]   ;;  %v2017_v26 = vld [vmem:[%s2978_s1 + $0x1a0] ss:$8 sps:$4 sm:$0xff]  }
   0xa   :  { %1004 = vmatpush1.bf16.msra.mxu1 %v2062_v21  ;;  %v2072_v27 = vld [vmem:[%s2978_s1 + $0x24] ss:$8 sps:$4 sm:$0xff]   ;;  %v2018_v28 = vld [vmem:[%s2978_s1 + $0x1b4] ss:$8 sps:$4 sm:$0xff]   ;;  %v2074_v29 = vld [vmem:[%s2978_s1 + $0x20] ss:$8 sps:$4 sm:$0xff]  }
   0xb   :  { %1061 = vmatpush1.bf16.msra.mxu0 %v1993_v5  ;;  %1005 = vmatprep.subr.bf16.mxu1 %v2066_v24  ;;  %v2078_v30 = vld [vmem:[%s2978_s1 + $0x34] ss:$8 sps:$4 sm:$0xff]   ;;  %v2020_v31 = vld [vmem:[%s2978_s1 + $0x1b0] ss:$8 sps:$4 sm:$0xff]   ;;  %v2021_v32 = vld [vmem:[%s2978_s1 + $0x1c4] ss:$8 sps:$4 sm:$0xff]  }
   0xc   :  { %1062 = vmatprep.subr.bf16.mxu0 %v1994_v6  ;;  %v2080_v33 = vld [vmem:[%s2978_s1 + $0x30] ss:$8 sps:$4 sm:$0xff]   ;;  %v2084_v34 = vld [vmem:[%s2978_s1 + $0x44] ss:$8 sps:$4 sm:$0xff]   ;;  %v2023_v35 = vld [vmem:[%s2978_s1 + $0x1c0] ss:$8 sps:$4 sm:$0xff]  }
   0xd   :  { %v2024_v36 = vld [vmem:[%s2978_s1 + $0x1d4] ss:$8 sps:$4 sm:$0xff]   ;;  %v2086_v37 = vld [vmem:[%s2978_s1 + $0x40] ss:$8 sps:$4 sm:$0xff]   ;;  %v2026_v39 = vld [vmem:[%s2978_s1 + $0x1d0] ss:$8 sps:$4 sm:$0xff]  }
   0xe   :  { %1006 = vmatpush1.bf16.msra.mxu1 %v2068_v25  ;;  %v2090_v38 = vld [vmem:[%s2978_s1 + $0x54] ss:$8 sps:$4 sm:$0xff]   ;;  %v2027_v40 = vld [vmem:[%s2978_s1 + $0x1e4] ss:$8 sps:$4 sm:$0xff]   ;;  %v2092_v41 = vld [vmem:[%s2978_s1 + $0x50] ss:$8 sps:$4 sm:$0xff]  }
   0xf   :  { %1063 = vmatpush1.bf16.msra.mxu0 %v1996_v7  ;;  %1007 = vmatprep.subr.bf16.mxu1 %v2072_v27  ;;  %v2096_v42 = vld [vmem:[%s2978_s1 + $0x64] ss:$8 sps:$4 sm:$0xff]   ;;  %v2029_v43 = vld [vmem:[%s2978_s1 + $0x1e0] ss:$8 sps:$4 sm:$0xff]   ;;  %v2030_v44 = vld [vmem:[%s2978_s1 + $0x1f4] ss:$8 sps:$4 sm:$0xff]  }
  0x10   :  { %1064 = vmatprep.subr.bf16.mxu0 %v1997_v8  ;;  %v2098_v45 = vld [vmem:[%s2978_s1 + $0x60] ss:$8 sps:$4 sm:$0xff]   ;;  %v2105_v46 = vld [vmem:[%s2978_s1 + $0x74] ss:$8 sps:$4 sm:$0xff]   ;;  %v2032_v47 = vld [vmem:[%s2978_s1 + $0x1f0] ss:$8 sps:$4 sm:$0xff]  }
  0x11   :  { %v2038_v48 = vld [vmem:[%s2978_s1 + $0x204] ss:$8 sps:$4 sm:$0xff]   ;;  %v2107_v49 = vld [vmem:[%s2978_s1 + $0x70] ss:$8 sps:$4 sm:$0xff]   ;;  %v2036_v52 = vld [vmem:[%s2978_s1 + $0x200] ss:$8 sps:$4 sm:$0xff]  }
  0x12   :  { %1008 = vmatpush1.bf16.msra.mxu1 %v2074_v29  ;;  %v2033_v50 = vld [vmem:[%s2979_s0 + $0x8] ss:$36 sps:$4 sm:$0xff]   ;;  %v2099_v53 = vld [vmem:[%s2979_s0 + $0x54] ss:$36 sps:$4 sm:$0xff]  }
  0x13   :  { %1065 = vmatpush1.bf16.msra.mxu0 %v1999_v9  ;;  %1009 = vmatprep.subr.bf16.mxu1 %v2078_v30  ;;  %v2111_v51 = vld [vmem:[%s2978_s1 + $0x84] ss:$8 sps:$4 sm:$0xff]   ;;  %v2041_v54 = vld [vmem:[%s2978_s1 + $0x214] ss:$8 sps:$4 sm:$0xff]   ;;  %v2113_v55 = vld [vmem:[%s2978_s1 + $0x80] ss:$8 sps:$4 sm:$0xff]  }
  0x14   :  { %1066 = vmatprep.subr.bf16.mxu0 %v2000_v10  ;;  %v2120_v56 = vld [vmem:[%s2978_s1 + $0x94] ss:$8 sps:$4 sm:$0xff]   ;;  %v2039_v57 = vld [vmem:[%s2978_s1 + $0x210] ss:$8 sps:$4 sm:$0xff]   ;;  %v2044_v58 = vld [vmem:[%s2978_s1 + $0x224] ss:$8 sps:$4 sm:$0xff]  }
  0x15   :  { %v2122_v59 = vld [vmem:[%s2978_s1 + $0x90] ss:$8 sps:$4 sm:$0xff]   ;;  %v2126_v61 = vld [vmem:[%s2978_s1 + $0xa4] ss:$8 sps:$4 sm:$0xff]   ;;  %v2042_v62 = vld [vmem:[%s2978_s1 + $0x220] ss:$8 sps:$4 sm:$0xff]  }
  0x16   :  { %1010 = vmatpush1.bf16.msra.mxu1 %v2080_v33  ;;  %v2104_v60 = vld [vmem:[%s2979_s0 + $0x50] ss:$36 sps:$4 sm:$0xff]   ;;  %v2128_v1 = vld [vmem:[%s2978_s1 + $0xa0] ss:$8 sps:$4 sm:$0xff]   ;;  %v2050_v4 = vld [vmem:[%s2978_s1 + $0x244] ss:$8 sps:$4 sm:$0xff]  }
  0x17   :  { %1067 = vmatpush1.bf16.msra.mxu0 %v2002_v11  ;;  %1011 = vmatprep.subr.bf16.mxu1 %v2084_v34  ;;  %v2116_v63 = vld [vmem:[%s2979_s0 + $0x14] ss:$36 sps:$4 sm:$0xff]   ;;  %v2138_v6 = vld [vmem:[%s2978_s1 + $0xc4] ss:$8 sps:$4 sm:$0xff]   ;;  %v2048_v7 = vld [vmem:[%s2978_s1 + $0x240] ss:$8 sps:$4 sm:$0xff]  }
  0x18   :  { %1068 = vmatprep.subr.bf16.mxu0 %v2003_v12  ;;  %v2047_v0 = vld [vmem:[%s2978_s1 + $0x234] ss:$8 sps:$4 sm:$0xff]   ;;  %v2045_v3 = vld [vmem:[%s2978_s1 + $0x230] ss:$8 sps:$4 sm:$0xff]   ;;  %v2164_v8 = vld [vmem:[%s2979_s0 + $0x4] ss:$36 sps:$4 sm:$0xff]  }
  0x19   :  { %v2132_v2 = vld [vmem:[%s2978_s1 + $0xb4] ss:$8 sps:$4 sm:$0xff]   ;;  %v2134_v5 = vld [vmem:[%s2978_s1 + $0xb0] ss:$8 sps:$4 sm:$0xff]   ;;  %v2140_v10 = vld [vmem:[%s2978_s1 + $0xc0] ss:$8 sps:$4 sm:$0xff]   ;;  %1035 = vmatprep.mubr.bf16.mxu1 %v2164_v8 }
  0x1a   :  { %1012 = vmatpush1.bf16.msra.mxu1 %v2086_v37  ;;  %v2053_v9 = vld [vmem:[%s2978_s1 + $0x254] ss:$8 sps:$4 sm:$0xff]   ;;  %v2051_v12 = vld [vmem:[%s2978_s1 + $0x250] ss:$8 sps:$4 sm:$0xff]   ;;  %v2056_v13 = vld [vmem:[%s2978_s1 + $0x264] ss:$8 sps:$4 sm:$0xff]  }
  0x1b   :  { %1069 = vmatpush1.bf16.msra.mxu0 %v2005_v14  ;;  %1013 = vmatprep.subr.bf16.mxu1 %v2090_v38  ;;  %v2144_v11 = vld [vmem:[%s2978_s1 + $0xd4] ss:$8 sps:$4 sm:$0xff]   ;;  %v2146_v14 = vld [vmem:[%s2978_s1 + $0xd0] ss:$8 sps:$4 sm:$0xff]   ;;  %v2065_v21 = vld [vmem:[%s2978_s1 + $0x284] ss:$8 sps:$4 sm:$0xff]  }
  0x1c   :  { %1070 = vmatprep.subr.bf16.mxu0 %v2006_v15  ;;  %v2150_v15 = vld [vmem:[%s2978_s1 + $0xe4] ss:$8 sps:$4 sm:$0xff]   ;;  %v2057_v20 = vld [vmem:[%s2978_s1 + $0x270] ss:$8 sps:$4 sm:$0xff]   ;;  %v2071_v25 = vld [vmem:[%s2978_s1 + $0x294] ss:$8 sps:$4 sm:$0xff]  }
  0x1d   :  { %v2167_v24 = vld [vmem:[%s2978_s1 + $0x404] ss:$8 sps:$4 sm:$0xff]   ;;  %v2165_v27 = vld [vmem:[%s2978_s1 + $0x400] ss:$8 sps:$4 sm:$0xff]   ;;  %v2173_v29 = vld [vmem:[%s2978_s1 + $0x414] ss:$8 sps:$4 sm:$0xff]  }
  0x1e   :  { %1014 = vmatpush1.bf16.msra.mxu1 %v2092_v41  ;;  %v2069_v30 = vld [vmem:[%s2978_s1 + $0x290] ss:$8 sps:$4 sm:$0xff]   ;;  %v2179_v33 = vld [vmem:[%s2978_s1 + $0x424] ss:$8 sps:$4 sm:$0xff]   ;;  %v2075_v34 = vld [vmem:[%s2978_s1 + $0x2a0] ss:$8 sps:$4 sm:$0xff]  }
  0x1f   :  { %1071 = vmatpush1.bf16.msra.mxu0 %v2008_v16  ;;  %1015 = vmatprep.subr.bf16.mxu1 %v2096_v42  ;;  %v2054_v16 = vld [vmem:[%s2978_s1 + $0x260] ss:$8 sps:$4 sm:$0xff]   ;;  %v2185_v38 = vld [vmem:[%s2978_s1 + $0x434] ss:$8 sps:$4 sm:$0xff]   ;;  %v2183_v42 = vld [vmem:[%s2978_s1 + $0x430] ss:$8 sps:$4 sm:$0xff]  }
  0x20   :  { %1072 = vmatprep.subr.bf16.mxu0 %v2009_v17  ;;  %v2059_v17 = vld [vmem:[%s2978_s1 + $0x274] ss:$8 sps:$4 sm:$0xff]   ;;  %v2177_v37 = vld [vmem:[%s2978_s1 + $0x420] ss:$8 sps:$4 sm:$0xff]  }
  0x21   :  { %v2087_v41 = vld [vmem:[%s2978_s1 + $0x2c0] ss:$8 sps:$4 sm:$0xff]  }
  0x22   :  { %1016 = vmatpush1.bf16.msra.mxu1 %v2098_v45  ;;  %v2191_v45 = vld [vmem:[%s2978_s1 + $0x444] ss:$8 sps:$4 sm:$0xff]   ;;  %v2221_v8 = vld [vmem:[%s2979_s0 + $0x1c] ss:$36 sps:$4 sm:$0xff]  }
  0x23   :  { %1073 = vmatpush1.bf16.msra.mxu0 %v2011_v18  ;;  %1017 = vmatprep.subr.bf16.mxu1 %v2105_v46  ;;  %v2152_v18 = vld [vmem:[%s2978_s1 + $0xe0] ss:$8 sps:$4 sm:$0xff]  }
  0x24   :  { %1074 = vmatprep.subr.bf16.mxu0 %v2012_v19  ;;  %v2156_v19 = vld [vmem:[%s2978_s1 + $0xf4] ss:$8 sps:$4 sm:$0xff]   ;;  %v2189_v46 = vld [vmem:[%s2978_s1 + $0x440] ss:$8 sps:$4 sm:$0xff]  }
  0x26   :  { %1018 = vmatpush1.bf16.msra.mxu1 %v2107_v49  ;;  %v2103_v49 = vld [vmem:[%s2978_s1 + $0x2e4] ss:$8 sps:$4 sm:$0xff]  }
  0x27   :  { %1075 = vmatpush1.bf16.msra.mxu0 %v2014_v22  ;;  %1019 = vmatprep.subr.bf16.mxu1 %v2111_v51  ;;  %v2158_v22 = vld [vmem:[%s2978_s1 + $0xf0] ss:$8 sps:$4 sm:$0xff]   ;;  %v2208_v51 = vld [vmem:[%s2978_s1 + $0x464] ss:$8 sps:$4 sm:$0xff]  }
  0x28   :  { %1076 = vmatprep.subr.bf16.mxu0 %v2015_v23  ;;  %v2063_v23 = vld [vmem:[%s2978_s1 + $0x280] ss:$8 sps:$4 sm:$0xff]  }
  0x2a   :  { %1020 = vmatpush1.bf16.msra.mxu1 %v2113_v55  ;;  %v2215_v55 = vld [vmem:[%s2978_s1 + $0x474] ss:$8 sps:$4 sm:$0xff]  }
  0x2b   :  { %1077 = vmatpush1.bf16.msra.mxu0 %v2017_v26  ;;  %1021 = vmatprep.subr.bf16.mxu1 %v2120_v56  ;;  %v2162_v26 = vld [vmem:[%s2979_s0] ss:$36 sps:$4 sm:$0xff]   ;;  %v2108_v56 = vld [vmem:[%s2978_s1 + $0x2f0] ss:$8 sps:$4 sm:$0xff]  }
  0x2c   :  { %1078 = vmatprep.subr.bf16.mxu0 %v2018_v28  ;;  %v2201_v28 = vld [vmem:[%s2979_s0 + $0x4c] ss:$36 sps:$4 sm:$0xff]  }
  0x2e   :  { %1022 = vmatpush1.bf16.msra.mxu1 %v2122_v59  ;;  %v2114_v59 = vld [vmem:[%s2979_s0 + $0x10] ss:$36 sps:$4 sm:$0xff]  }
  0x2f   :  { %1079 = vmatpush1.bf16.msra.mxu0 %v2020_v31  ;;  %1023 = vmatprep.subr.bf16.mxu1 %v2126_v61  ;;  %v2077_v31 = vld [vmem:[%s2978_s1 + $0x2a4] ss:$8 sps:$4 sm:$0xff]   ;;  %v2117_v61 = vld [vmem:[%s2978_s1 + $0x300] ss:$8 sps:$4 sm:$0xff]  }
  0x30   :  { %1080 = vmatprep.subr.bf16.mxu0 %v2021_v32  ;;  %v2171_v32 = vld [vmem:[%s2978_s1 + $0x410] ss:$8 sps:$4 sm:$0xff]  }
  0x32   :  { %1024 = vmatpush1.bf16.msra.mxu1 %v2128_v1  ;;  %v2227_v1 = vld [vmem:[%s2980_s3] ss:$8 sps:$4 sm:$0xff]  }
  0x33   :  { %1081 = vmatpush1.bf16.msra.mxu0 %v2023_v35  ;;  %1025 = vmatprep.subr.bf16.mxu1 %v2132_v2  ;;  %v2083_v35 = vld [vmem:[%s2978_s1 + $0x2b4] ss:$8 sps:$4 sm:$0xff]  }
  0x34   :  { %1082 = vmatprep.subr.bf16.mxu0 %v2024_v36  ;;  %v2203_v36 = vld [vmem:[%s2979_s0 + $0x48] ss:$36 sps:$4 sm:$0xff]   ;;  %v2232_v2 = vld [vmem:[%s2980_s3 + $0x14] ss:$8 sps:$4 sm:$0xff]  }
  0x36   :  { %1026 = vmatpush1.bf16.msra.mxu1 %v2134_v5  ;;  %v2230_v5 = vld [vmem:[%s2980_s3 + $0x10] ss:$8 sps:$4 sm:$0xff]  }
  0x37   :  { %1083 = vmatpush1.bf16.msra.mxu0 %v2026_v39  ;;  %1027 = vmatprep.subr.bf16.mxu1 %v2138_v6  ;;  %v2081_v39 = vld [vmem:[%s2978_s1 + $0x2b0] ss:$8 sps:$4 sm:$0xff]  }
  0x38   :  { %1084 = vmatprep.subr.bf16.mxu0 %v2027_v40  ;;  %v2089_v40 = vld [vmem:[%s2978_s1 + $0x2c4] ss:$8 sps:$4 sm:$0xff]   ;;  %v2209_v6 = vld [vmem:[%s2979_s0 + $0x58] ss:$36 sps:$4 sm:$0xff]  }
  0x3a   :  { %1028 = vmatpush1.bf16.msra.mxu1 %v2140_v10  ;;  %v2225_v10 = vld [vmem:[%s2979_s0 + $0x68] ss:$36 sps:$4 sm:$0xff]  }
  0x3b   :  { %1085 = vmatpush1.bf16.msra.mxu0 %v2029_v43  ;;  %1029 = vmatprep.subr.bf16.mxu1 %v2144_v11  ;;  %v2291_v43 = vmov 0   ;;  %v2135_v11 = vld [vmem:[%s2978_s1 + $0x330] ss:$8 sps:$4 sm:$0xff]  }
  0x3c   :  { %1086 = vmatprep.subr.bf16.mxu0 %v2030_v44  ;;  %v2095_v44 = vld [vmem:[%s2978_s1 + $0x2d4] ss:$8 sps:$4 sm:$0xff]  }
  0x3e   :  { %1030 = vmatpush1.bf16.msra.mxu1 %v2146_v14  ;;  %v2149_v14 = vld [vmem:[%s2978_s1 + $0x354] ss:$8 sps:$4 sm:$0xff]  }
  0x3f   :  { %1087 = vmatpush1.bf16.msra.mxu0 %v2032_v47  ;;  %1031 = vmatprep.subr.bf16.mxu1 %v2150_v15  ;;  %v2197_v47 = vld [vmem:[%s2978_s1 + $0x454] ss:$8 sps:$4 sm:$0xff]   ;;  %v2147_v15 = vld [vmem:[%s2978_s1 + $0x350] ss:$8 sps:$4 sm:$0xff]  }
  0x40   :  { %1109 = vmatprep.subr.bf16.mxu0 %v2038_v48  ;;  %v2093_v48 = vld [vmem:[%s2978_s1 + $0x2d0] ss:$8 sps:$4 sm:$0xff]  }
  0x42   :  { %1089 = vmatmul.mubr.bf16.vlgmr.msra.gmra.mrb[0].mxu0 %v2033_v50  ;;  %1032 = vmatpush1.bf16.msra.mxu1 %v2152_v18  ;;  %v2195_v50 = vld [vmem:[%s2978_s1 + $0x450] ss:$8 sps:$4 sm:$0xff]   ;;  %v2161_v18 = vld [vmem:[%s2978_s1 + $0x374] ss:$8 sps:$4 sm:$0xff]  }
  0x43   :  { %1110 = vmatpush1.bf16.msra.mxu0 %v2036_v52  ;;  %1098 = vmatprep.mubr.bf16.mxu0 %v2099_v53  ;;  %v2101_v52 = vld [vmem:[%s2978_s1 + $0x2e0] ss:$8 sps:$4 sm:$0xff]   ;;  %v2110_v53 = vld [vmem:[%s2978_s1 + $0x2f4] ss:$8 sps:$4 sm:$0xff]  }
  0x44   :  { %1111 = vmatprep.subr.bf16.mxu0 %v2041_v54  ;;  %1033 = vmatprep.subr.bf16.mxu1 %v2156_v19  ;;  %v2206_v54 = vld [vmem:[%s2978_s1 + $0x460] ss:$8 sps:$4 sm:$0xff]   ;;  %v2159_v19 = vld [vmem:[%s2978_s1 + $0x370] ss:$8 sps:$4 sm:$0xff]  }
  0x46   :  { %1034 = vmatpush1.bf16.msra.mxu1 %v2158_v22  ;;  %v2176_v22 = vld [vmem:[%s2978_s1 + $0x394] ss:$8 sps:$4 sm:$0xff]  }
  0x47   :  { %1112 = vmatpush1.bf16.msra.mxu0 %v2039_v57  ;;  %1215 = vmatprep.subr.bf16.mxu1 %v2167_v24  ;;  %v2119_v57 = vld [vmem:[%s2978_s1 + $0x304] ss:$8 sps:$4 sm:$0xff]  }
  0x48   :  { %1113 = vmatprep.subr.bf16.mxu0 %v2044_v58  ;;  %v2213_v58 = vld [vmem:[%s2978_s1 + $0x470] ss:$8 sps:$4 sm:$0xff]   ;;  %v2182_v24 = vld [vmem:[%s2978_s1 + $0x3a4] ss:$8 sps:$4 sm:$0xff]  }
  0x49   :  { %1036 = vmatmul.mubr.bf16.vlgmr.msra.gmra.mrb[0].mxu1 %v2162_v26  ;;  %v2188_v26 = vld [vmem:[%s2978_s1 + $0x3b4] ss:$8 sps:$4 sm:$0xff]  }
  0x4a   :  { %1099 = vmatmul.mubr.bf16.gmra.mrb[4].mxu0 %v2104_v60  ;;  %1216 = vmatpush1.bf16.msra.mxu1 %v2165_v27  ;;  %v2229_v60 = vld [vmem:[%s2980_s3 + $0x4] ss:$8 sps:$4 sm:$0xff]   ;;  %v2186_v27 = vld [vmem:[%s2978_s1 + $0x3b0] ss:$8 sps:$4 sm:$0xff]  }
  0x4b   :  { %1114 = vmatpush1.bf16.msra.mxu0 %v2042_v62  ;;  %1141 = vmatprep.mubr.bf16.mxu0 %v2116_v63  ;;  %v2204_v62 = vld [vmem:[%s2979_s0 + $0x5c] ss:$36 sps:$4 sm:$0xff]  }
  0x4c   :  { %1115 = vmatprep.subr.bf16.mxu0 %v2047_v0  ;;  %1045 = vmatprep.mubr.bf16.mxu1 %v2201_v28  ;;  %v2125_v63 = vld [vmem:[%s2978_s1 + $0x314] ss:$8 sps:$4 sm:$0xff]   ;;  %v2222_v0 = vld [vmem:[%s2979_s0 + $0x20] ss:$36 sps:$4 sm:$0xff]  }
  0x4d   :  { %1217 = vmatprep.subr.bf16.mxu1 %v2173_v29  ;;  %v2194_v28 = vld [vmem:[%s2978_s1 + $0x3c4] ss:$8 sps:$4 sm:$0xff]   ;;  %v2192_v29 = vld [vmem:[%s2978_s1 + $0x3c0] ss:$8 sps:$4 sm:$0xff]  }
  0x4e   :  { %1218 = vmatpush1.bf16.msra.mxu1 %v2171_v32  ;;  %v2212_v32 = vld [vmem:[%s2978_s1 + $0x3e4] ss:$8 sps:$4 sm:$0xff]  }
  0x4f   :  { %1116 = vmatpush1.bf16.msra.mxu0 %v2045_v3  ;;  %1219 = vmatprep.subr.bf16.mxu1 %v2179_v33  ;;  %v2123_v3 = vld [vmem:[%s2978_s1 + $0x310] ss:$8 sps:$4 sm:$0xff]   ;;  %v2210_v33 = vld [vmem:[%s2978_s1 + $0x3e0] ss:$8 sps:$4 sm:$0xff]  }
  0x50   :  { %1117 = vmatprep.subr.bf16.mxu0 %v2050_v4  ;;  %v2131_v4 = vld [vmem:[%s2978_s1 + $0x324] ss:$8 sps:$4 sm:$0xff]  }
  0x51   :  { %1046 = vmatmul.mubr.bf16.gmra.mrb[4].mxu1 %v2203_v36  ;;  %v2235_v36 = vld [vmem:[%s2980_s3 + $0x24] ss:$8 sps:$4 sm:$0xff]  }
  0x52   :  { %1220 = vmatpush1.bf16.msra.mxu1 %v2177_v37  ;;  %1247 = vmatprep.mubr.bf16.mxu1 %v2291_v43  ;;  %v2216_v37 = vld [vmem:[%s2978_s1 + $0x3f0] ss:$8 sps:$4 sm:$0xff]  }
  0x53   :  { %1118 = vmatpush1.bf16.msra.mxu0 %v2048_v7  ;;  %1221 = vmatprep.subr.bf16.mxu1 %v2185_v38  ;;  %v2129_v7 = vld [vmem:[%s2978_s1 + $0x320] ss:$8 sps:$4 sm:$0xff]   ;;  %v2238_v38 = vld [vmem:[%s2980_s3 + $0x34] ss:$8 sps:$4 sm:$0xff]  }
  0x54   :  { %1119 = vmatprep.subr.bf16.mxu0 %v2053_v9  ;;  %v2137_v9 = vld [vmem:[%s2978_s1 + $0x334] ss:$8 sps:$4 sm:$0xff]  }
  0x56   :  { %1222 = vmatpush1.bf16.msra.mxu1 %v2183_v42  ;;  %v2223_v42 = vld [vmem:[%s2979_s0 + $0x64] ss:$36 sps:$4 sm:$0xff]  }
  0x57   :  { %1120 = vmatpush1.bf16.msra.mxu0 %v2051_v12  ;;  %1223 = vmatprep.subr.bf16.mxu1 %v2191_v45  ;;  %v2143_v12 = vld [vmem:[%s2978_s1 + $0x344] ss:$8 sps:$4 sm:$0xff]   ;;  %v2242_v45 = vld [vmem:[%s2980_s3 + $0x50] ss:$8 sps:$4 sm:$0xff]  }
  0x58   :  { %1121 = vmatprep.subr.bf16.mxu0 %v2056_v13  ;;  %v2141_v13 = vld [vmem:[%s2978_s1 + $0x340] ss:$8 sps:$4 sm:$0xff]  }
  0x5a   :  { %1224 = vmatpush1.bf16.msra.mxu1 %v2189_v46  ;;  %v2226_v46 = vld [vmem:[%s2979_s0 + $0x60] ss:$36 sps:$4 sm:$0xff]  }
  0x5b   :  { %1122 = vmatpush1.bf16.msra.mxu0 %v2054_v16  ;;  %1225 = vmatprep.subr.bf16.mxu1 %v2197_v47  ;;  %v2155_v16 = vld [vmem:[%s2978_s1 + $0x364] ss:$8 sps:$4 sm:$0xff]  }
  0x5c   :  { %1123 = vmatprep.subr.bf16.mxu0 %v2059_v17  ;;  %v2153_v17 = vld [vmem:[%s2978_s1 + $0x360] ss:$8 sps:$4 sm:$0xff]   ;;  %v2247_v47 = vld [vmem:[%s2980_s3 + $0x64] ss:$8 sps:$4 sm:$0xff]  }
  0x5e   :  { %1226 = vmatpush1.bf16.msra.mxu1 %v2195_v50  ;;  %v2248_v50 = vld [vmem:[%s2980_s3 + $0x70] ss:$8 sps:$4 sm:$0xff]  }
  0x5f   :  { %1124 = vmatpush1.bf16.msra.mxu0 %v2057_v20  ;;  %1227 = vmatprep.subr.bf16.mxu1 %v2208_v51  ;;  %v2170_v20 = vld [vmem:[%s2978_s1 + $0x384] ss:$8 sps:$4 sm:$0xff]  }
  0x60   :  { %1125 = vmatprep.subr.bf16.mxu0 %v2065_v21  ;;  %v2168_v21 = vld [vmem:[%s2978_s1 + $0x380] ss:$8 sps:$4 sm:$0xff]   ;;  %v2253_v51 = vld [vmem:[%s2980_s3 + $0x84] ss:$8 sps:$4 sm:$0xff]  }
  0x62   :  { %1228 = vmatpush1.bf16.msra.mxu1 %v2206_v54  ;;  %v2256_v54 = vld [vmem:[%s2980_s3 + $0x94] ss:$8 sps:$4 sm:$0xff]  }
  0x63   :  { %1126 = vmatpush1.bf16.msra.mxu0 %v2063_v23  ;;  %1229 = vmatprep.subr.bf16.mxu1 %v2215_v55  ;;  %v2174_v23 = vld [vmem:[%s2978_s1 + $0x390] ss:$8 sps:$4 sm:$0xff]   ;;  %v2259_v55 = vld [vmem:[%s2980_s3 + $0xa4] ss:$8 sps:$4 sm:$0xff]  }
  0x64   :  { %1127 = vmatprep.subr.bf16.mxu0 %v2071_v25  ;;  %v2180_v25 = vld [vmem:[%s2978_s1 + $0x3a0] ss:$8 sps:$4 sm:$0xff]  }
  0x66   :  { %1230 = vmatpush1.bf16.msra.mxu1 %v2213_v58  ;;  %v2260_v58 = vld [vmem:[%s2980_s3 + $0xb0] ss:$8 sps:$4 sm:$0xff]  }
  0x67   :  { %1128 = vmatpush1.bf16.msra.mxu0 %v2069_v30  ;;  %1496 = vmatprep.subr.bf16.mxu1 %v2229_v60  ;;  %v2200_v30 = vld [vmem:[%s2978_s1 + $0x3d4] ss:$8 sps:$4 sm:$0xff]   ;;  %v2263_v60 = vld [vmem:[%s2980_s3 + $0xc0] ss:$8 sps:$4 sm:$0xff]  }
  0x68   :  { %1129 = vmatprep.subr.bf16.mxu0 %v2077_v31  ;;  %v2198_v31 = vld [vmem:[%s2978_s1 + $0x3d0] ss:$8 sps:$4 sm:$0xff]  }
  0x69   :  { %1248 = vmatmul.mubr.bf16.vlgmr.msra.gmra.mrb[8].mxu1 %v2222_v0  ;;  %v2269_v0 = vld [vmem:[%s2980_s3 + $0xe0] ss:$8 sps:$4 sm:$0xff]  }
  0x6a   :  { %1257 = vmatprep.mubr.bf16.mxu1 %v2291_v43  ;;  %1497 = vmatpush1.bf16.msra.mxu1 %v2227_v1  ;;  %v2239_v43 = vld [vmem:[%s2980_s3 + $0x40] ss:$8 sps:$4 sm:$0xff]   ;;  %v2274_v1 = vld [vmem:[%s2980_s3 + $0xf4] ss:$8 sps:$4 sm:$0xff]  }
  0x6b   :  { %1130 = vmatpush1.bf16.msra.mxu0 %v2075_v34  ;;  %1498 = vmatprep.subr.bf16.mxu1 %v2232_v2  ;;  %v2218_v34 = vld [vmem:[%s2978_s1 + $0x3f4] ss:$8 sps:$4 sm:$0xff]   ;;  %v2272_v2 = vld [vmem:[%s2980_s3 + $0xf0] ss:$8 sps:$4 sm:$0xff]  }
  0x6c   :  { %1131 = vmatprep.subr.bf16.mxu0 %v2083_v35  ;;  %v2233_v35 = vld [vmem:[%s2980_s3 + $0x20] ss:$8 sps:$4 sm:$0xff]  }
  0x6e   :  { %1499 = vmatpush1.bf16.msra.mxu1 %v2230_v5 }
  0x6f   :  { %1132 = vmatpush1.bf16.msra.mxu0 %v2081_v39  ;;  %1500 = vmatprep.subr.bf16.mxu1 %v2235_v36  ;;  %v2236_v39 = vld [vmem:[%s2980_s3 + $0x30] ss:$8 sps:$4 sm:$0xff]  }
  0x70   :  { %1133 = vmatprep.subr.bf16.mxu0 %v2089_v40  ;;  %v2219_v40 = vld [vmem:[%s2979_s0 + $0x18] ss:$36 sps:$4 sm:$0xff]  }
  0x71   :  { %1258 = vmatmul.mubr.bf16.gmra.mrb[12].mxu1 %v2225_v10 }
  0x72   :  { %1501 = vmatpush1.bf16.msra.mxu1 %v2233_v35 }
  0x73   :  { %1134 = vmatpush1.bf16.msra.mxu0 %v2087_v41  ;;  %1502 = vmatprep.subr.bf16.mxu1 %v2238_v38  ;;  %v2241_v41 = vld [vmem:[%s2980_s3 + $0x44] ss:$8 sps:$4 sm:$0xff]  }
  0x74   :  { %1135 = vmatprep.subr.bf16.mxu0 %v2095_v44  ;;  %v2244_v44 = vld [vmem:[%s2980_s3 + $0x54] ss:$8 sps:$4 sm:$0xff]  }
  0x76   :  { %1503 = vmatpush1.bf16.msra.mxu1 %v2236_v39 }
  0x77   :  { %1136 = vmatpush1.bf16.msra.mxu0 %v2093_v48  ;;  %1504 = vmatprep.subr.bf16.mxu1 %v2241_v41  ;;  %v2245_v48 = vld [vmem:[%s2980_s3 + $0x60] ss:$8 sps:$4 sm:$0xff]  }
  0x78   :  { %1137 = vmatprep.subr.bf16.mxu0 %v2103_v49  ;;  %v2250_v49 = vld [vmem:[%s2980_s3 + $0x74] ss:$8 sps:$4 sm:$0xff]  }
  0x7a   :  { %1505 = vmatpush1.bf16.msra.mxu1 %v2239_v43 }
  0x7b   :  { %1138 = vmatpush1.bf16.msra.mxu0 %v2101_v52  ;;  %1506 = vmatprep.subr.bf16.mxu1 %v2244_v44  ;;  %v2251_v52 = vld [vmem:[%s2980_s3 + $0x80] ss:$8 sps:$4 sm:$0xff]  }
  0x7c   :  { %1139 = vmatprep.subr.bf16.mxu0 %v2110_v53  ;;  %v2254_v53 = vld [vmem:[%s2980_s3 + $0x90] ss:$8 sps:$4 sm:$0xff]  }
  0x7e   :  { %1507 = vmatpush1.bf16.msra.mxu1 %v2242_v45  ;;  %v1274_v45 = vld [vmem:[%s2982_s2] sm:$0x3] }
  0x7f   :  { %1140 = vmatpush1.bf16.msra.mxu0 %v2108_v56  ;;  %1508 = vmatprep.subr.bf16.mxu1 %v2247_v47  ;;  %v2257_v56 = vld [vmem:[%s2980_s3 + $0xa0] ss:$8 sps:$4 sm:$0xff]  }
  0x80   :  { %1162 = vmatprep.subr.bf16.mxu0 %v2119_v57  ;;  %v2262_v57 = vld [vmem:[%s2980_s3 + $0xb4] ss:$8 sps:$4 sm:$0xff]  }
  0x82   :  { %1142 = vmatmul.mubr.bf16.vlgmr.msra.gmra.mrb[0].mxu0 %v2114_v59  ;;  %1509 = vmatpush1.bf16.msra.mxu1 %v2245_v48  ;;  %v2265_v59 = vld [vmem:[%s2980_s3 + $0xc4] ss:$8 sps:$4 sm:$0xff]  }
  0x83   :  { %1163 = vmatpush1.bf16.msra.mxu0 %v2117_v61  ;;  %1151 = vmatprep.mubr.bf16.mxu0 %v2204_v62  ;;  %v2268_v61 = vld [vmem:[%s2980_s3 + $0xd4] ss:$8 sps:$4 sm:$0xff]   ;;  %v2266_v62 = vld [vmem:[%s2980_s3 + $0xd0] ss:$8 sps:$4 sm:$0xff]  }
  0x84   :  { %1164 = vmatprep.subr.bf16.mxu0 %v2125_v63  ;;  %1510 = vmatprep.subr.bf16.mxu1 %v2250_v49  ;;  %v2271_v63 = vld [vmem:[%s2980_s3 + $0xe4] ss:$8 sps:$4 sm:$0xff]  }
  0x86   :  { %1511 = vmatpush1.bf16.msra.mxu1 %v2248_v50 }
  0x87   :  { %1165 = vmatpush1.bf16.msra.mxu0 %v2123_v3  ;;  %1512 = vmatprep.subr.bf16.mxu1 %v2253_v51  ;;  %v2275_v3 = vld [vmem:[%s2981_s5 + $0x40] sm:$0xff]  }
  0x88   :  { %1166 = vmatprep.subr.bf16.mxu0 %v2131_v4 }
  0x8a   :  { %1152 = vmatmul.mubr.bf16.gmra.mrb[4].mxu0 %v2209_v6  ;;  %1513 = vmatpush1.bf16.msra.mxu1 %v2251_v52 }
  0x8b   :  { %1167 = vmatpush1.bf16.msra.mxu0 %v2129_v7  ;;  %1194 = vmatprep.mubr.bf16.mxu0 %v2221_v8 }
  0x8c   :  { %1168 = vmatprep.subr.bf16.mxu0 %v2137_v9  ;;  %1514 = vmatprep.subr.bf16.mxu1 %v2256_v54 }
  0x8e   :  { %1515 = vmatpush1.bf16.msra.mxu1 %v2254_v53 }
  0x8f   :  { %1169 = vmatpush1.bf16.msra.mxu0 %v2135_v11  ;;  %1516 = vmatprep.subr.bf16.mxu1 %v2259_v55 }
  0x90   :  { %1170 = vmatprep.subr.bf16.mxu0 %v2143_v12 }
  0x92   :  { %1517 = vmatpush1.bf16.msra.mxu1 %v2257_v56 }
  0x93   :  { %1171 = vmatpush1.bf16.msra.mxu0 %v2141_v13  ;;  %1518 = vmatprep.subr.bf16.mxu1 %v2262_v57 }
  0x94   :  { %1172 = vmatprep.subr.bf16.mxu0 %v2149_v14 }
  0x96   :  { %1519 = vmatpush1.bf16.msra.mxu1 %v2260_v58 }
  0x97   :  { %1173 = vmatpush1.bf16.msra.mxu0 %v2147_v15  ;;  %1520 = vmatprep.subr.bf16.mxu1 %v2265_v59 }
  0x98   :  { %1174 = vmatprep.subr.bf16.mxu0 %v2155_v16 }
  0x9a   :  { %1521 = vmatpush1.bf16.msra.mxu1 %v2263_v60 }
  0x9b   :  { %1175 = vmatpush1.bf16.msra.mxu0 %v2153_v17  ;;  %1522 = vmatprep.subr.bf16.mxu1 %v2268_v61 }
  0x9c   :  { %1176 = vmatprep.subr.bf16.mxu0 %v2161_v18 }
  0x9e   :  { %1523 = vmatpush1.bf16.msra.mxu1 %v2266_v62  ;;  %v2276_v62 = vld [vmem:[%s2981_s5] sm:$0xff]  }
  0x9f   :  { %1177 = vmatpush1.bf16.msra.mxu0 %v2159_v19  ;;  %1524 = vmatprep.subr.bf16.mxu1 %v2271_v63 }
  0xa0   :  { %1178 = vmatprep.subr.bf16.mxu0 %v2170_v20 }
  0xa2   :  { %1525 = vmatpush1.bf16.msra.mxu1 %v2269_v0  ;;  %v2277_v0 = vld [vmem:[%s2981_s5 + $0x48] sm:$0xff]  }
  0xa3   :  { %1179 = vmatpush1.bf16.msra.mxu0 %v2168_v21  ;;  %1526 = vmatprep.subr.bf16.mxu1 %v2274_v1  ;;  %v2278_v1 = vld [vmem:[%s2981_s5 + $0x8] sm:$0xff]  }
  0xa4   :  { %1180 = vmatprep.subr.bf16.mxu0 %v2176_v22 }
  0xa6   :  { %1527 = vmatpush1.bf16.msra.mxu1 %v2272_v2  ;;  %v2279_v2 = vld [vmem:[%s2981_s5 + $0x50] sm:$0xff]  }
  0xa7   :  { %1181 = vmatpush1.bf16.msra.mxu0 %v2174_v23  ;;  %1930 = vmatprep.subr.bf16.mxu1 %v2275_v3  ;;  %v2280_v3 = vld [vmem:[%s2981_s5 + $0x10] sm:$0xff]  }
  0xa8   :  { %1182 = vmatprep.subr.bf16.mxu0 %v2182_v24 }
  0xab   :  { %1183 = vmatpush1.bf16.msra.mxu0 %v2180_v25 }
  0xac   :  { %1184 = vmatprep.subr.bf16.mxu0 %v2188_v26 }
  0xaf   :  { %1185 = vmatpush1.bf16.msra.mxu0 %v2186_v27 }
  0xb0   :  { %1186 = vmatprep.subr.bf16.mxu0 %v2194_v28  ;;  %v1276_v28 = vlaneseq }
  0xb3   :  { %1187 = vmatpush1.bf16.msra.mxu0 %v2192_v29 }
  0xb4   :  { %1188 = vmatprep.subr.bf16.mxu0 %v2200_v30 }
  0xb7   :  { %1189 = vmatpush1.bf16.msra.mxu0 %v2198_v31 }
  0xb8   :  { %1190 = vmatprep.subr.bf16.mxu0 %v2212_v32 }
  0xbb   :  { %1191 = vmatpush1.bf16.msra.mxu0 %v2210_v33  ;;  %v2917_v33 = vshrl.u32 %v1276_v28, 7 }
  0xbc   :  { %1192 = vmatprep.subr.bf16.mxu0 %v2218_v34 }
  0xbf   :  { %1193 = vmatpush1.bf16.msra.mxu0 %v2216_v37 }
  0xc2   :  { %1195 = vmatmul.mubr.bf16.vlgmr.msra.gmra.mrb[0].mxu0 %v2219_v40 }
  0xc3   :  { %1204 = vmatprep.mubr.bf16.mxu0 %v2223_v42  ;;  %v1278_v42 = vsub.s32 0, %v2917_v33 }
  0xc5   :  { %v1279_v52 = vrot.slane %v1274_v45, %v1278_v42 }
  0xca   :  { %1205 = vmatmul.mubr.bf16.gmra.mrb[4].mxu0 %v2226_v46  ;;  %v1282_v46 = vsub.s32 1, %v2917_v33 }
  0xcc   :  { %v1283_v54 = vrot.slane %v1274_v45, %v1282_v46 }
 0x11c   :  { %v1037_v4 = vpop.f32.mrb[0].mxu1 }
 0x11d   :  { %v1039_v5 = vpop.f32.mrb[1].mxu1 }
 0x11e   :  { %v1041_v6 = vpop.f32.mrb[2].mxu1 }
 0x11f   :  { %v1043_v7 = vpop.f32.mrb[3].mxu1 }
 0x124   :  { %v1047_v8 = vpop.f32.mrb[4].mxu1 }
 0x125   :  { %v1049_v9 = vpop.f32.mrb[5].mxu1 }
 0x126   :  { %v1051_v10 = vpop.f32.mrb[6].mxu1 }
 0x127   :  { %v1053_v11 = vpop.f32.mrb[7].mxu1 }
 0x13c   :  { %v1249_v12 = vpop.f32.mrb[8].mxu1 }
 0x13d   :  { %v1251_v13 = vpop.f32.mrb[9].mxu1 }
 0x13e   :  { %v1253_v14 = vpop.f32.mrb[10].mxu1 }
 0x13f   :  { %v1255_v15 = vpop.f32.mrb[11].mxu1 }
 0x144   :  { %v1259_v16 = vpop.f32.mrb[12].mxu1 }
 0x145   :  { %v1261_v17 = vpop.f32.mrb[13].mxu1 }
 0x146   :  { %v1263_v18 = vpop.f32.mrb[14].mxu1 }
 0x147   :  { %v1265_v19 = vpop.f32.mrb[15].mxu1 }
 0x195   :  { %v1196_v20 = vpop.f32.mrb[0].mxu0 }
 0x196   :  { %v1952_v21 = vadd.f32 %v1196_v20, %v1037_v4  ;;  %v1198_v22 = vpop.f32.mrb[1].mxu0  ;;  %v2281_v4 = vld [vmem:[%s2981_s5 + $0x58] sm:$0xff]  }
 0x197   :  { %v1954_v23 = vadd.f32 %v1198_v22, %v1039_v5  ;;  %v1200_v24 = vpop.f32.mrb[2].mxu0  ;;  %v2282_v5 = vld [vmem:[%s2981_s5 + $0x18] sm:$0xff]  }
 0x198   :  { %v1953_v25 = vadd.f32 %v1952_v21, %v1249_v12  ;;  %v1956_v26 = vadd.f32 %v1200_v24, %v1041_v6  ;;  %v1202_v27 = vpop.f32.mrb[3].mxu0  ;;  %v2283_v6 = vld [vmem:[%s2981_s5 + $0x60] sm:$0xff]   ;;  %v2289_v12 = vld [vmem:[%s2981_s5 + $0x78] sm:$0xff]  }
 0x199   :  { %v1955_v29 = vadd.f32 %v1954_v23, %v1251_v13  ;;  %v1958_v30 = vadd.f32 %v1202_v27, %v1043_v7  ;;  %v2284_v7 = vld [vmem:[%s2981_s5 + $0x20] sm:$0xff]   ;;  %v2290_v13 = vld [vmem:[%s2981_s5 + $0x38] sm:$0xff]  }
 0x19a   :  { %v1957_v31 = vadd.f32 %v1956_v26, %v1253_v14  ;;  %v1324_v14 = vld [vmem:[%s2983_s4] sm:$0x3] }
 0x19b   :  { %v1959_v32 = vadd.f32 %v1958_v30, %v1255_v15  ;;  %v1329_v15 = vrot.slane %v1324_v14, %v1278_v42  ;;  %v1913_v26 = vld [vmem:[%s2984_s6] ss:$0 sm:$0xff] }
 0x19d   :  { %v1206_v34 = vpop.f32.mrb[4].mxu0 }
 0x19e   :  { %v1960_v35 = vadd.f32 %v1206_v34, %v1047_v8  ;;  %v1208_v36 = vpop.f32.mrb[5].mxu0  ;;  %v2285_v8 = vld [vmem:[%s2981_s5 + $0x68] sm:$0xff]  }
 0x19f   :  { %v1962_v37 = vadd.f32 %v1208_v36, %v1049_v9  ;;  %v1210_v38 = vpop.f32.mrb[6].mxu0  ;;  %v2286_v9 = vld [vmem:[%s2981_s5 + $0x28] sm:$0xff]  }
 0x1a0   :  { %v1961_v39 = vadd.f32 %v1960_v35, %v1259_v16  ;;  %v1964_v40 = vadd.f32 %v1210_v38, %v1051_v10  ;;  %v1212_v41 = vpop.f32.mrb[7].mxu0  ;;  %v2287_v10 = vld [vmem:[%s2981_s5 + $0x70] sm:$0xff]   ;;  %v1333_v16 = vrot.slane %v1324_v14, %v1282_v46 }
 0x1a1   :  { %v1963_v43 = vadd.f32 %v1962_v37, %v1261_v17  ;;  %v1966_v44 = vadd.f32 %v1212_v41, %v1053_v11  ;;  %v2288_v11 = vld [vmem:[%s2981_s5 + $0x30] sm:$0xff]  }
 0x1a2   :  { %v1268_v47 = vmax.f32 %v1953_v25, %v1961_v39  ;;  %v1965_v48 = vadd.f32 %v1964_v40, %v1263_v18 }
 0x1a3   :  { %v1271_v49 = vmax.f32 %v1955_v29, %v1963_v43  ;;  %v1967_v50 = vadd.f32 %v1966_v44, %v1265_v19 }
 0x1a4   :  { %v1269_v51 = vmax.f32 %v1957_v31, %v1965_v48 }
 0x1a5   :  { %v1272_v53 = vmax.f32 %v1959_v32, %v1967_v50 }
 0x1a6   :  { %v1270_v55 = vmax.f32 %v1268_v47, %v1269_v51 }
 0x1a7   :  { %v1273_v56 = vmax.f32 %v1271_v49, %v1272_v53 }
 0x1a8   :  { %v1286_v57 = vadd.f32 %v1279_v52, %v1270_v55 }
 0x1a9   :  { %v1287_v58 = vadd.f32 %v1283_v54, %v1273_v56 }
 0x1aa   :  { %v1288_v59 = vmax.f32 %v1286_v57, 0.0 }
 0x1ab   :  { %v1289_v60 = vmax.f32 %v1287_v58, 0.0 }
 0x1ac   :  { %v1290_v63 = vpack.c.bf16 %v1288_v59, %v1288_v59 }
 0x1ad   :  { %v1291_v61 = vpack.c.bf16 %v1289_v60, %v1289_v60 }
 0x1af   :  { %1528 = vmatprep.mubr.bf16.mxu1 %v1291_v61 }
 0x1b0   :  { %1529 = vmatmul.mubr.bf16.vlgmr.msra.gmra.mrb[16].mxu1 %v1290_v63 }
 0x1b1   :  { %1931 = vmatpush3.bf16.msra.mxu1 %v2276_v62 }
 0x1b2   :  { %1932 = vmatprep.subr.bf16.mxu1 %v2277_v0 }
 0x1b5   :  { %1933 = vmatpush3.bf16.msra.mxu1 %v2278_v1 }
 0x1b6   :  { %1934 = vmatprep.subr.bf16.mxu1 %v2279_v2 }
 0x1b9   :  { %1935 = vmatpush3.bf16.msra.mxu1 %v2280_v3 }
 0x1ba   :  { %1936 = vmatprep.subr.bf16.mxu1 %v2281_v4 }
 0x1bd   :  { %1937 = vmatpush3.bf16.msra.mxu1 %v2282_v5 }
 0x1be   :  { %1938 = vmatprep.subr.bf16.mxu1 %v2283_v6 }
 0x1c1   :  { %1939 = vmatpush3.bf16.msra.mxu1 %v2284_v7 }
 0x1c2   :  { %1940 = vmatprep.subr.bf16.mxu1 %v2285_v8 }
 0x1c5   :  { %1941 = vmatpush3.bf16.msra.mxu1 %v2286_v9 }
 0x1c6   :  { %1942 = vmatprep.subr.bf16.mxu1 %v2287_v10 }
 0x1c9   :  { %1943 = vmatpush3.bf16.msra.mxu1 %v2288_v11 }
 0x1ca   :  { %1944 = vmatprep.subr.bf16.mxu1 %v2289_v12 }
 0x1cd   :  { %1945 = vmatpush3.bf16.msra.mxu1 %v2290_v13 }
 0x283   :  { %v1530_v17 = vpop.f32.mrb[16].mxu1 }
 0x284   :  { %v1531_v18 = vadd.f32 %v1530_v17, %v1329_v15  ;;  %v1532_v19 = vpop.f32.mrb[17].mxu1 }
 0x285   :  { %v1533_v20 = vadd.f32 %v1532_v19, %v1333_v16  ;;  %v1534_v21 = vpop.f32.mrb[18].mxu1 }
 0x286   :  { %v1535_v22 = vpop.f32.mrb[19].mxu1  ;;  %v1537_v24 = vpack.c.bf16 %v1531_v18, %v1531_v18 }
 0x287   :  { %v1538_v23 = vpack.c.bf16 %v1533_v20, %v1533_v20 }
 0x289   :  { %1706 = vmatprep.mubr.bf16.mxu1 %v1538_v23 }
 0x28a   :  { %1707 = vmatmul.mubr.bf16.vlgmr.msra.gmra.mrb[20].mxu1 %v1537_v24 }
 0x35d   :  { %v1946_v25 = vpop.f32.mrb[20].mxu1 }
 0x35e   :  { %v1947_v27 = vpop.f32.mrb[21].mxu1 }
 0x35f   :  { %v1948_v28 = vadd.f32 %v1947_v27, %v1946_v25  ;;  %v1949_v29 = vpop.f32.mrb[22].mxu1 }
 0x360   :  { %v1950_v30 = vpop.f32.mrb[23].mxu1 }
 0x361   :  { %v1709_v31 = vadd.f32 %v1948_v28, %v1913_v26 }
 0x363   :  { %1714 = vst [vmem:[%s2985_s7] sm:$0xff] %v1709_v31 }

</bundles_post_ra>
